<compile_context>
chip_gen: v5e
topology: v5e:2x2
jax: 0.10.0
libtpu: 0.0.40
codegen_flags: <defaults>
</compile_context>

<pallas_src>
import functools

import jax
import jax.numpy as jnp
from jax import lax
from jax.experimental import pallas as pl
from jax.experimental.pallas import tpu as pltpu


# ----------------------------------------------------------------------------
# One bidirectional LSTM step on combined state.
#
# Gate pre-activations use the interleaved layout (8H columns, each block H):
#   [i_f, i_b, f_f, f_b, o_f, o_b, g_f, g_b]
# Combined state layout (2H columns): [h_f | h_b], [c_f | c_b].
# At loop iteration s, the fwd half corresponds to time s and the bwd half to
# time T-1-s (the bwd direction walks the sequence in reverse).
# ----------------------------------------------------------------------------
def _bilstm_step(g_pre, h_cat, c_cat, whh_comb, H, first):
    f32 = jnp.float32
    if not first:                                    # h_cat == 0 at step 0
        g_pre = g_pre + jnp.dot(h_cat, whh_comb, preferred_element_type=f32)
    sg = jax.nn.sigmoid(g_pre[:, 0:6 * H])           # i_f i_b f_f f_b o_f o_b
    gg = jnp.tanh(g_pre[:, 6 * H:8 * H])             # [tanh(g_f) | tanh(g_b)]
    i_cat = sg[:, 0:2 * H]
    f_cat = sg[:, 2 * H:4 * H]
    o_cat = sg[:, 4 * H:6 * H]
    c_new = f_cat * c_cat + i_cat * gg
    h_new = o_cat * jnp.tanh(c_new)
    return h_new, c_new


# ----------------------------------------------------------------------------
# Fused kernel: 2-layer bidirectional LSTM + avg/max pool + FC + log_softmax.
#   xcat_ref : (T*Bp, 2E)  [x(t) | x(T-1-t)] time-major, batch padded to Bp
#   w1_ref   : (2E, 8H)    layer-1 input weights, spread to interleaved layout
#   b1_ref   : (1, 8H)     combined (b_ih + b_hh) for both directions
#   whh1_ref : (2H, 8H)    layer-1 recurrent weights (block-structured)
#   w2a_ref  : (2H, 8H)    layer-2 input weights for A  (iteration-order h1)
#   w2r_ref  : (2H, 8H)    layer-2 input weights for A_rev (reversed order)
#   b2_ref   : (1, 8H)
#   whh2_ref : (2H, 8H)
#   wfc_avg  : (2H, C)     FC weight half applied to the avg-pool features
#   wfc_max  : (2H, C)     FC weight half applied to the max-pool features
#   fcb_ref  : (1, C)
#   out_ref  : (Bp, C)     log-probabilities (padded rows are garbage, sliced
#                          off in the wrapper)
# ----------------------------------------------------------------------------
def textrnn_kernel(xcat_ref, w1_ref, b1_ref, whh1_ref,
                   w2a_ref, w2r_ref, b2_ref, whh2_ref,
                   wfc_avg_ref, wfc_max_ref, fcb_ref,
                   out_ref, *, T, Bp, H):
    f32 = jnp.float32

    # ----------------------- layer 1 -----------------------
    # Hoisted input projection: one matmul for all timesteps and both dirs.
    gin1 = (jnp.dot(xcat_ref[...], w1_ref[...], preferred_element_type=f32)
            + b1_ref[...])                           # (T*Bp, 8H)
    whh1 = whh1_ref[...]

    h_cat = jnp.zeros((Bp, 2 * H), f32)
    c_cat = jnp.zeros((Bp, 2 * H), f32)
    h1 = []                                          # register-resident outputs
    for s in range(T):                               # fully unrolled, static
        g_pre = gin1[s * Bp:(s + 1) * Bp, :]         # full-tile sublane slice
        h_cat, c_cat = _bilstm_step(g_pre, h_cat, c_cat, whh1, H, s == 0)
        h1.append(h_cat)                             # = [h_f(s) | h_b(T-1-s)]

    # ----------------------- layer 2 -----------------------
    # Register-resident assembly of the layer-2 input (aligned sublane concats
    # only); the weight layout (w2a / w2r) absorbs the fwd/bwd time reversal.
    a_fr = jnp.concatenate(h1, axis=0)               # (T*Bp, 2H) iteration order
    a_rf = jnp.concatenate(h1[::-1], axis=0)         # (T*Bp, 2H) reversed order
    gin2 = (jnp.dot(a_fr, w2a_ref[...], preferred_element_type=f32)
            + jnp.dot(a_rf, w2r_ref[...], preferred_element_type=f32)
            + b2_ref[...])                           # (T*Bp, 8H)
    whh2 = whh2_ref[...]

    h_cat = jnp.zeros((Bp, 2 * H), f32)
    c_cat = jnp.zeros((Bp, 2 * H), f32)
    sum_cat = None
    max_cat = None
    for s in range(T):
        g_pre = gin2[s * Bp:(s + 1) * Bp, :]
        h_cat, c_cat = _bilstm_step(g_pre, h_cat, c_cat, whh2, H, s == 0)
        # Incremental avg/max pooling (time-permutation invariant, so the
        # [h_f(s) | h_b(T-1-s)] combined layout pools correctly per half).
        if s == 0:
            sum_cat = h_cat
            max_cat = h_cat
        else:
            sum_cat = sum_cat + h_cat
            max_cat = jnp.maximum(max_cat, h_cat)

    # ------------- FC + log_softmax -------------
    avg_cat = sum_cat * (1.0 / T)                    # (Bp, 2H)
    logits = (jnp.dot(avg_cat, wfc_avg_ref[...], preferred_element_type=f32)
              + jnp.dot(max_cat, wfc_max_ref[...], preferred_element_type=f32)
              + fcb_ref[...])                        # (Bp, C)
    m = jnp.max(logits, axis=1, keepdims=True)
    sh = logits - m
    lse = jnp.log(jnp.sum(jnp.exp(sh), axis=1, keepdims=True))
    out_ref[...] = sh - lse


# ----------------------------------------------------------------------------
# One-time weight preparation (hoisted out of the per-call forward).
# ----------------------------------------------------------------------------
def _spread_cols(wT, H, is_bwd):
    """Map a (D, 4H) weight with PyTorch column order [i, f, g, o] into the
    (D, 8H) interleaved layout [i_f i_b f_f f_b o_f o_b g_f g_b], zero-filling
    the other direction's columns."""
    D = wT.shape[0]
    z = jnp.zeros((D, H), wT.dtype)
    i = wT[:, 0:H]
    f = wT[:, H:2 * H]
    g = wT[:, 2 * H:3 * H]
    o = wT[:, 3 * H:4 * H]
    blocks = [z, i, z, f, z, o, z, g] if is_bwd else [i, z, f, z, o, z, g, z]
    return jnp.concatenate(blocks, axis=1)


def _prep_bias(bf, bb, H):
    return (_spread_cols(bf.reshape(1, -1), H, False)
            + _spread_cols(bb.reshape(1, -1), H, True))       # (1, 8H)


def prepare_params(params):
    """Build kernel-ready weight layouts once (not per forward call)."""
    assert params["num_layers"] == 2
    H = params["hidden"]
    wih_f1, whh_f1, bih_f1, bhh_f1 = params["lstm"][(0, "fwd")]
    wih_b1, whh_b1, bih_b1, bhh_b1 = params["lstm"][(0, "bwd")]
    wih_f2, whh_f2, bih_f2, bhh_f2 = params["lstm"][(1, "fwd")]
    wih_b2, whh_b2, bih_b2, bhh_b2 = params["lstm"][(1, "bwd")]

    # Layer 1: input weight for the [x | x_reversed] concatenated input.
    w1 = jnp.concatenate([_spread_cols(wih_f1.T, H, False),    # rows 0:E  (x)
                          _spread_cols(wih_b1.T, H, True)],    # rows E:2E (x_rev)
                         axis=0)                               # (2E, 8H)
    b1 = _prep_bias(bih_f1 + bhh_f1, bih_b1 + bhh_b1, H)
    whh1 = jnp.concatenate([_spread_cols(whh_f1.T, H, False),  # rows 0:H  (h_f)
                            _spread_cols(whh_b1.T, H, True)],  # rows H:2H (h_b)
                           axis=0)                             # (2H, 8H)

    # Layer 2: split per source half (h1_fwd rows / h1_bwd rows) and recombine
    # so the two register-assembled inputs A (iteration order) and A_rev
    # (reversed order) directly drive the correct gates:
    #   A[:, :H]    = h1_fwd(s)      -> fwd gates   -> w2f rows 0:H
    #   A[:, H:]    = h1_bwd(T-1-s)  -> bwd gates   -> w2b rows H:2H
    #   Arev[:, :H] = h1_fwd(T-1-s)  -> bwd gates   -> w2b rows 0:H
    #   Arev[:, H:] = h1_bwd(s)      -> fwd gates   -> w2f rows H:2H
    w2f = _spread_cols(wih_f2.T, H, False)                     # (2H, 8H)
    w2b = _spread_cols(wih_b2.T, H, True)                      # (2H, 8H)
    w2a = jnp.concatenate([w2f[:H, :], w2b[H:, :]], axis=0)    # (2H, 8H)
    w2r = jnp.concatenate([w2b[:H, :], w2f[H:, :]], axis=0)    # (2H, 8H)
    b2 = _prep_bias(bih_f2 + bhh_f2, bih_b2 + bhh_b2, H)
    whh2 = jnp.concatenate([_spread_cols(whh_f2.T, H, False),
                            _spread_cols(whh_b2.T, H, True)], axis=0)

    fc_w, fc_b = params["fc_w"], params["fc_b"]
    C = fc_w.shape[0]
    wfc_avg = jnp.transpose(fc_w[:, 0:2 * H])                  # (2H, C)
    wfc_max = jnp.transpose(fc_w[:, 2 * H:])                   # (2H, C)
    fcb = fc_b.reshape(1, C)

    return dict(H=H, embedding=params["embedding"],
                w1=w1, b1=b1, whh1=whh1,
                w2a=w2a, w2r=w2r, b2=b2, whh2=whh2,
                wfc_avg=wfc_avg, wfc_max=wfc_max, fcb=fcb)


# ----------------------------------------------------------------------------
# Full model forward: embedding gather + tiny input glue, everything else fused.
# ----------------------------------------------------------------------------
def model_forward(x_ids, pp):
    """x_ids: (T, B) int32 token ids (same convention as the PyTorch module)."""
    H = pp["H"]
    emb = pp["embedding"][x_ids].astype(jnp.float32)           # (T, B, E)
    T, B, E = emb.shape
    Bp = ((B + 7) // 8) * 8                                    # pad batch -> full sublane tile
    emb_p = jnp.pad(emb, ((0, 0), (0, Bp - B), (0, 0)))        # zero pad rows
    # [x(t) | x(T-1-t)] along features: one hoisted matmul covers both dirs.
    xcat = jnp.concatenate([emb_p, emb_p[::-1]], axis=-1).reshape(T * Bp, 2 * E)

    C = pp["fcb"].shape[1]
    kernel = functools.partial(textrnn_kernel, T=T, Bp=Bp, H=H)
    out_p = pl.pallas_call(
        kernel,
        out_shape=jax.ShapeDtypeStruct((Bp, C), jnp.float32),
        in_specs=[pl.BlockSpec(memory_space=pltpu.MemorySpace.VMEM)] * 11,
        out_specs=pl.BlockSpec(memory_space=pltpu.MemorySpace.VMEM),
    )(xcat, pp["w1"], pp["b1"], pp["whh1"],
      pp["w2a"], pp["w2r"], pp["b2"], pp["whh2"],
      pp["wfc_avg"], pp["wfc_max"], pp["fcb"])
    return out_p[:B]                                           # drop padded batch rows


# ----------------------------------------------------------------------------
# Pure-JAX reference (PyTorch gate order / layout) for correctness checking.
# ----------------------------------------------------------------------------
def _lstm_dir_ref(x_tm, w_ih, w_hh, b_ih, b_hh):
    T, B, _ = x_tm.shape
    H = w_hh.shape[1]

    def step(carry, x_t):
        h, c = carry
        g = x_t @ w_ih.T + h @ w_hh.T + b_ih + b_hh
        i = jax.nn.sigmoid(g[:, :H])
        f = jax.nn.sigmoid(g[:, H:2 * H])
        gg = jnp.tanh(g[:, 2 * H:3 * H])
        o = jax.nn.sigmoid(g[:, 3 * H:])
        c = f * c + i * gg
        h = o * jnp.tanh(c)
        return (h, c), h

    (_, _), hs = lax.scan(step, (jnp.zeros((B, H)), jnp.zeros((B, H))), x_tm)
    return hs


def model_forward_ref(x_ids, params):
    emb = params["embedding"][x_ids]
    inp = emb
    for l in range(params["num_layers"]):
        wf = params["lstm"][(l, "fwd")]
        wb = params["lstm"][(l, "bwd")]
        h_f = _lstm_dir_ref(inp, *wf)
        h_b = jnp.flip(_lstm_dir_ref(jnp.flip(inp, axis=0), *wb), axis=0)
        inp = jnp.concatenate([h_f, h_b], axis=-1)
    avg = jnp.mean(inp, axis=0)
    mx = jnp.max(inp, axis=0)
    feat = jnp.concatenate([avg, mx], axis=1)
    logits = feat @ params["fc_w"].T + params["fc_b"]
    return jax.nn.log_softmax(logits, axis=1)


# ----------------------------------------------------------------------------
# Deterministic parameter construction (synthetic, PyTorch-shaped).
# ----------------------------------------------------------------------------
def make_params(key, vocab, embed, hidden, num_layers, num_class):
    keys = iter(jax.random.split(key, 64))
    k = 1.0 / jnp.sqrt(hidden)

    params = {"num_layers": num_layers, "hidden": hidden}
    params["embedding"] = jax.random.normal(next(keys), (vocab, embed), jnp.float32)

    lstm = {}
    for l in range(num_layers):
        d_in = embed if l == 0 else 2 * hidden
        for dname in ("fwd", "bwd"):
            w_ih = jax.random.uniform(next(keys), (4 * hidden, d_in), jnp.float32, -k, k)
            w_hh = jax.random.uniform(next(keys), (4 * hidden, hidden), jnp.float32, -k, k)
            b_ih = jax.random.uniform(next(keys), (4 * hidden,), jnp.float32, -k, k)
            b_hh = jax.random.uniform(next(keys), (4 * hidden,), jnp.float32, -k, k)
            lstm[(l, dname)] = (w_ih, w_hh, b_ih, b_hh)
    params["lstm"] = lstm

    kf = 1.0 / jnp.sqrt(4 * hidden)
    params["fc_w"] = jax.random.uniform(next(keys), (num_class, 4 * hidden), jnp.float32, -kf, kf)
    params["fc_b"] = jax.random.uniform(next(keys), (num_class,), jnp.float32, -kf, kf)
    return params


if __name__ == "__main__":
    VOCAB, EMBED, HIDDEN, LAYERS, NUM_CLASS = 100, 32, 32, 2, 4
    SEQ, BATCH = 8, 2

    key = jax.random.PRNGKey(0)
    k_param, k_data = jax.random.split(key)
    params = make_params(k_param, VOCAB, EMBED, HIDDEN, LAYERS, NUM_CLASS)

    # One-time weight preparation (hoisted out of the per-call forward).
    prepped = prepare_params(params)

    # Input: (seq_len, batch) int token ids, as the PyTorch module expects.
    x_ids = jax.random.randint(k_data, (SEQ, BATCH), 0, VOCAB, dtype=jnp.int32)

    out = model_forward(x_ids, prepped)
    out = jax.block_until_ready(out)

    ref = jax.block_until_ready(model_forward_ref(x_ids, params))

    assert out.shape == (BATCH, NUM_CLASS), out.shape
    assert jnp.allclose(out, ref, atol=1e-4, rtol=1e-4), (out, ref)
    # log_softmax rows should exponentiate-sum to ~1
    assert jnp.allclose(jnp.sum(jnp.exp(out), axis=1), 1.0, atol=1e-4)

    print("KERNEL_OK")
</pallas_src>

<mosaic_0001>
module attributes {stable_mosaic.version = 11 : i64} {
  func.func @textrnn_kernel(%arg0: memref<64x64xf32, #tpu.memory_space<vmem>>, %arg1: memref<64x256xf32, #tpu.memory_space<vmem>>, %arg2: memref<1x256xf32, #tpu.memory_space<vmem>>, %arg3: memref<64x256xf32, #tpu.memory_space<vmem>>, %arg4: memref<64x256xf32, #tpu.memory_space<vmem>>, %arg5: memref<64x256xf32, #tpu.memory_space<vmem>>, %arg6: memref<1x256xf32, #tpu.memory_space<vmem>>, %arg7: memref<64x256xf32, #tpu.memory_space<vmem>>, %arg8: memref<64x4xf32, #tpu.memory_space<vmem>>, %arg9: memref<64x4xf32, #tpu.memory_space<vmem>>, %arg10: memref<1x4xf32, #tpu.memory_space<vmem>>, %arg11: memref<8x4xf32, #tpu.memory_space<vmem>>) attributes {dimension_semantics = [], scalar_prefetch = 0 : i64, scratch_operands = 0 : i64, tpu.core_type = #tpu.core_type<tc>} {
    %c0 = arith.constant 0 : index
    %c0_0 = arith.constant 0 : index
    %0 = vector.load %arg0[%c0, %c0_0] : memref<64x64xf32, #tpu.memory_space<vmem>>, vector<64x64xf32>
    %c0_1 = arith.constant 0 : index
    %c0_2 = arith.constant 0 : index
    %1 = vector.load %arg1[%c0_1, %c0_2] : memref<64x256xf32, #tpu.memory_space<vmem>>, vector<64x256xf32>
    %cst = arith.constant dense<0.000000e+00> : vector<64x256xf32>
    %2 = tpu.matmul %0, %1, %cst {dimension_numbers = #tpu.dot_dimension_numbers<[1], [0], [0], [1], [0, 0, 1, 1], [], []>} : vector<64x64xf32>, vector<64x256xf32>, vector<64x256xf32> -> vector<64x256xf32>
    %c0_3 = arith.constant 0 : index
    %c0_4 = arith.constant 0 : index
    %3 = vector.load %arg2[%c0_3, %c0_4] : memref<1x256xf32, #tpu.memory_space<vmem>>, vector<1x256xf32>
    %4 = vector.broadcast %3 : vector<1x256xf32> to vector<64x256xf32>
    %5 = arith.addf %2, %4 : vector<64x256xf32>
    %c0_5 = arith.constant 0 : index
    %c0_6 = arith.constant 0 : index
    %6 = vector.load %arg3[%c0_5, %c0_6] : memref<64x256xf32, #tpu.memory_space<vmem>>, vector<64x256xf32>
    %cst_7 = arith.constant 0.000000e+00 : f32
    %7 = vector.broadcast %cst_7 : f32 to vector<8x64xf32>
    %8 = vector.extract_strided_slice %5 {offsets = [0, 0], sizes = [8, 256], strides = [1, 1]} : vector<64x256xf32> to vector<8x256xf32>
    %9 = vector.extract_strided_slice %8 {offsets = [0, 0], sizes = [8, 192], strides = [1, 1]} : vector<8x256xf32> to vector<8x192xf32>
    %10 = arith.negf %9 : vector<8x192xf32>
    %11 = math.exp %10 : vector<8x192xf32>
    %cst_8 = arith.constant 1.000000e+00 : f32
    %12 = vector.broadcast %cst_8 : f32 to vector<8x192xf32>
    %13 = arith.addf %12, %11 : vector<8x192xf32>
    %14 = arith.divf %12, %13 : vector<8x192xf32>
    %15 = vector.extract_strided_slice %8 {offsets = [0, 192], sizes = [8, 64], strides = [1, 1]} : vector<8x256xf32> to vector<8x64xf32>
    %16 = math.tanh %15 : vector<8x64xf32>
    %17 = vector.extract_strided_slice %14 {offsets = [0, 0], sizes = [8, 64], strides = [1, 1]} : vector<8x192xf32> to vector<8x64xf32>
    %18 = vector.extract_strided_slice %14 {offsets = [0, 64], sizes = [8, 64], strides = [1, 1]} : vector<8x192xf32> to vector<8x64xf32>
    %19 = vector.extract_strided_slice %14 {offsets = [0, 128], sizes = [8, 64], strides = [1, 1]} : vector<8x192xf32> to vector<8x64xf32>
    %20 = arith.mulf %18, %7 : vector<8x64xf32>
    %21 = arith.mulf %17, %16 : vector<8x64xf32>
    %22 = arith.addf %20, %21 : vector<8x64xf32>
    %23 = math.tanh %22 : vector<8x64xf32>
    %24 = arith.mulf %19, %23 : vector<8x64xf32>
    %25 = vector.extract_strided_slice %5 {offsets = [8, 0], sizes = [8, 256], strides = [1, 1]} : vector<64x256xf32> to vector<8x256xf32>
    %cst_9 = arith.constant dense<0.000000e+00> : vector<8x256xf32>
    %26 = tpu.matmul %24, %6, %cst_9 {dimension_numbers = #tpu.dot_dimension_numbers<[1], [0], [0], [1], [0, 0, 1, 1], [], []>} : vector<8x64xf32>, vector<64x256xf32>, vector<8x256xf32> -> vector<8x256xf32>
    %27 = arith.addf %25, %26 : vector<8x256xf32>
    %28 = vector.extract_strided_slice %27 {offsets = [0, 0], sizes = [8, 192], strides = [1, 1]} : vector<8x256xf32> to vector<8x192xf32>
    %29 = arith.negf %28 : vector<8x192xf32>
    %30 = math.exp %29 : vector<8x192xf32>
    %cst_10 = arith.constant 1.000000e+00 : f32
    %31 = vector.broadcast %cst_10 : f32 to vector<8x192xf32>
    %32 = arith.addf %31, %30 : vector<8x192xf32>
    %33 = arith.divf %31, %32 : vector<8x192xf32>
    %34 = vector.extract_strided_slice %27 {offsets = [0, 192], sizes = [8, 64], strides = [1, 1]} : vector<8x256xf32> to vector<8x64xf32>
    %35 = math.tanh %34 : vector<8x64xf32>
    %36 = vector.extract_strided_slice %33 {offsets = [0, 0], sizes = [8, 64], strides = [1, 1]} : vector<8x192xf32> to vector<8x64xf32>
    %37 = vector.extract_strided_slice %33 {offsets = [0, 64], sizes = [8, 64], strides = [1, 1]} : vector<8x192xf32> to vector<8x64xf32>
    %38 = vector.extract_strided_slice %33 {offsets = [0, 128], sizes = [8, 64], strides = [1, 1]} : vector<8x192xf32> to vector<8x64xf32>
    %39 = arith.mulf %37, %22 : vector<8x64xf32>
    %40 = arith.mulf %36, %35 : vector<8x64xf32>
    %41 = arith.addf %39, %40 : vector<8x64xf32>
    %42 = math.tanh %41 : vector<8x64xf32>
    %43 = arith.mulf %38, %42 : vector<8x64xf32>
    %44 = vector.extract_strided_slice %5 {offsets = [16, 0], sizes = [8, 256], strides = [1, 1]} : vector<64x256xf32> to vector<8x256xf32>
    %cst_11 = arith.constant dense<0.000000e+00> : vector<8x256xf32>
    %45 = tpu.matmul %43, %6, %cst_11 {dimension_numbers = #tpu.dot_dimension_numbers<[1], [0], [0], [1], [0, 0, 1, 1], [], []>} : vector<8x64xf32>, vector<64x256xf32>, vector<8x256xf32> -> vector<8x256xf32>
    %46 = arith.addf %44, %45 : vector<8x256xf32>
    %47 = vector.extract_strided_slice %46 {offsets = [0, 0], sizes = [8, 192], strides = [1, 1]} : vector<8x256xf32> to vector<8x192xf32>
    %48 = arith.negf %47 : vector<8x192xf32>
    %49 = math.exp %48 : vector<8x192xf32>
    %cst_12 = arith.constant 1.000000e+00 : f32
    %50 = vector.broadcast %cst_12 : f32 to vector<8x192xf32>
    %51 = arith.addf %50, %49 : vector<8x192xf32>
    %52 = arith.divf %50, %51 : vector<8x192xf32>
    %53 = vector.extract_strided_slice %46 {offsets = [0, 192], sizes = [8, 64], strides = [1, 1]} : vector<8x256xf32> to vector<8x64xf32>
    %54 = math.tanh %53 : vector<8x64xf32>
    %55 = vector.extract_strided_slice %52 {offsets = [0, 0], sizes = [8, 64], strides = [1, 1]} : vector<8x192xf32> to vector<8x64xf32>
    %56 = vector.extract_strided_slice %52 {offsets = [0, 64], sizes = [8, 64], strides = [1, 1]} : vector<8x192xf32> to vector<8x64xf32>
    %57 = vector.extract_strided_slice %52 {offsets = [0, 128], sizes = [8, 64], strides = [1, 1]} : vector<8x192xf32> to vector<8x64xf32>
    %58 = arith.mulf %56, %41 : vector<8x64xf32>
    %59 = arith.mulf %55, %54 : vector<8x64xf32>
    %60 = arith.addf %58, %59 : vector<8x64xf32>
    %61 = math.tanh %60 : vector<8x64xf32>
    %62 = arith.mulf %57, %61 : vector<8x64xf32>
    %63 = vector.extract_strided_slice %5 {offsets = [24, 0], sizes = [8, 256], strides = [1, 1]} : vector<64x256xf32> to vector<8x256xf32>
    %cst_13 = arith.constant dense<0.000000e+00> : vector<8x256xf32>
    %64 = tpu.matmul %62, %6, %cst_13 {dimension_numbers = #tpu.dot_dimension_numbers<[1], [0], [0], [1], [0, 0, 1, 1], [], []>} : vector<8x64xf32>, vector<64x256xf32>, vector<8x256xf32> -> vector<8x256xf32>
    %65 = arith.addf %63, %64 : vector<8x256xf32>
    %66 = vector.extract_strided_slice %65 {offsets = [0, 0], sizes = [8, 192], strides = [1, 1]} : vector<8x256xf32> to vector<8x192xf32>
    %67 = arith.negf %66 : vector<8x192xf32>
    %68 = math.exp %67 : vector<8x192xf32>
    %cst_14 = arith.constant 1.000000e+00 : f32
    %69 = vector.broadcast %cst_14 : f32 to vector<8x192xf32>
    %70 = arith.addf %69, %68 : vector<8x192xf32>
    %71 = arith.divf %69, %70 : vector<8x192xf32>
    %72 = vector.extract_strided_slice %65 {offsets = [0, 192], sizes = [8, 64], strides = [1, 1]} : vector<8x256xf32> to vector<8x64xf32>
    %73 = math.tanh %72 : vector<8x64xf32>
    %74 = vector.extract_strided_slice %71 {offsets = [0, 0], sizes = [8, 64], strides = [1, 1]} : vector<8x192xf32> to vector<8x64xf32>
    %75 = vector.extract_strided_slice %71 {offsets = [0, 64], sizes = [8, 64], strides = [1, 1]} : vector<8x192xf32> to vector<8x64xf32>
    %76 = vector.extract_strided_slice %71 {offsets = [0, 128], sizes = [8, 64], strides = [1, 1]} : vector<8x192xf32> to vector<8x64xf32>
    %77 = arith.mulf %75, %60 : vector<8x64xf32>
    %78 = arith.mulf %74, %73 : vector<8x64xf32>
    %79 = arith.addf %77, %78 : vector<8x64xf32>
    %80 = math.tanh %79 : vector<8x64xf32>
    %81 = arith.mulf %76, %80 : vector<8x64xf32>
    %82 = vector.extract_strided_slice %5 {offsets = [32, 0], sizes = [8, 256], strides = [1, 1]} : vector<64x256xf32> to vector<8x256xf32>
    %cst_15 = arith.constant dense<0.000000e+00> : vector<8x256xf32>
    %83 = tpu.matmul %81, %6, %cst_15 {dimension_numbers = #tpu.dot_dimension_numbers<[1], [0], [0], [1], [0, 0, 1, 1], [], []>} : vector<8x64xf32>, vector<64x256xf32>, vector<8x256xf32> -> vector<8x256xf32>
    %84 = arith.addf %82, %83 : vector<8x256xf32>
    %85 = vector.extract_strided_slice %84 {offsets = [0, 0], sizes = [8, 192], strides = [1, 1]} : vector<8x256xf32> to vector<8x192xf32>
    %86 = arith.negf %85 : vector<8x192xf32>
    %87 = math.exp %86 : vector<8x192xf32>
    %cst_16 = arith.constant 1.000000e+00 : f32
    %88 = vector.broadcast %cst_16 : f32 to vector<8x192xf32>
    %89 = arith.addf %88, %87 : vector<8x192xf32>
    %90 = arith.divf %88, %89 : vector<8x192xf32>
    %91 = vector.extract_strided_slice %84 {offsets = [0, 192], sizes = [8, 64], strides = [1, 1]} : vector<8x256xf32> to vector<8x64xf32>
    %92 = math.tanh %91 : vector<8x64xf32>
    %93 = vector.extract_strided_slice %90 {offsets = [0, 0], sizes = [8, 64], strides = [1, 1]} : vector<8x192xf32> to vector<8x64xf32>
    %94 = vector.extract_strided_slice %90 {offsets = [0, 64], sizes = [8, 64], strides = [1, 1]} : vector<8x192xf32> to vector<8x64xf32>
    %95 = vector.extract_strided_slice %90 {offsets = [0, 128], sizes = [8, 64], strides = [1, 1]} : vector<8x192xf32> to vector<8x64xf32>
    %96 = arith.mulf %94, %79 : vector<8x64xf32>
    %97 = arith.mulf %93, %92 : vector<8x64xf32>
    %98 = arith.addf %96, %97 : vector<8x64xf32>
    %99 = math.tanh %98 : vector<8x64xf32>
    %100 = arith.mulf %95, %99 : vector<8x64xf32>
    %101 = vector.extract_strided_slice %5 {offsets = [40, 0], sizes = [8, 256], strides = [1, 1]} : vector<64x256xf32> to vector<8x256xf32>
    %cst_17 = arith.constant dense<0.000000e+00> : vector<8x256xf32>
    %102 = tpu.matmul %100, %6, %cst_17 {dimension_numbers = #tpu.dot_dimension_numbers<[1], [0], [0], [1], [0, 0, 1, 1], [], []>} : vector<8x64xf32>, vector<64x256xf32>, vector<8x256xf32> -> vector<8x256xf32>
    %103 = arith.addf %101, %102 : vector<8x256xf32>
    %104 = vector.extract_strided_slice %103 {offsets = [0, 0], sizes = [8, 192], strides = [1, 1]} : vector<8x256xf32> to vector<8x192xf32>
    %105 = arith.negf %104 : vector<8x192xf32>
    %106 = math.exp %105 : vector<8x192xf32>
    %cst_18 = arith.constant 1.000000e+00 : f32
    %107 = vector.broadcast %cst_18 : f32 to vector<8x192xf32>
    %108 = arith.addf %107, %106 : vector<8x192xf32>
    %109 = arith.divf %107, %108 : vector<8x192xf32>
    %110 = vector.extract_strided_slice %103 {offsets = [0, 192], sizes = [8, 64], strides = [1, 1]} : vector<8x256xf32> to vector<8x64xf32>
    %111 = math.tanh %110 : vector<8x64xf32>
    %112 = vector.extract_strided_slice %109 {offsets = [0, 0], sizes = [8, 64], strides = [1, 1]} : vector<8x192xf32> to vector<8x64xf32>
    %113 = vector.extract_strided_slice %109 {offsets = [0, 64], sizes = [8, 64], strides = [1, 1]} : vector<8x192xf32> to vector<8x64xf32>
    %114 = vector.extract_strided_slice %109 {offsets = [0, 128], sizes = [8, 64], strides = [1, 1]} : vector<8x192xf32> to vector<8x64xf32>
    %115 = arith.mulf %113, %98 : vector<8x64xf32>
    %116 = arith.mulf %112, %111 : vector<8x64xf32>
    %117 = arith.addf %115, %116 : vector<8x64xf32>
    %118 = math.tanh %117 : vector<8x64xf32>
    %119 = arith.mulf %114, %118 : vector<8x64xf32>
    %120 = vector.extract_strided_slice %5 {offsets = [48, 0], sizes = [8, 256], strides = [1, 1]} : vector<64x256xf32> to vector<8x256xf32>
    %cst_19 = arith.constant dense<0.000000e+00> : vector<8x256xf32>
    %121 = tpu.matmul %119, %6, %cst_19 {dimension_numbers = #tpu.dot_dimension_numbers<[1], [0], [0], [1], [0, 0, 1, 1], [], []>} : vector<8x64xf32>, vector<64x256xf32>, vector<8x256xf32> -> vector<8x256xf32>
    %122 = arith.addf %120, %121 : vector<8x256xf32>
    %123 = vector.extract_strided_slice %122 {offsets = [0, 0], sizes = [8, 192], strides = [1, 1]} : vector<8x256xf32> to vector<8x192xf32>
    %124 = arith.negf %123 : vector<8x192xf32>
    %125 = math.exp %124 : vector<8x192xf32>
    %cst_20 = arith.constant 1.000000e+00 : f32
    %126 = vector.broadcast %cst_20 : f32 to vector<8x192xf32>
    %127 = arith.addf %126, %125 : vector<8x192xf32>
    %128 = arith.divf %126, %127 : vector<8x192xf32>
    %129 = vector.extract_strided_slice %122 {offsets = [0, 192], sizes = [8, 64], strides = [1, 1]} : vector<8x256xf32> to vector<8x64xf32>
    %130 = math.tanh %129 : vector<8x64xf32>
    %131 = vector.extract_strided_slice %128 {offsets = [0, 0], sizes = [8, 64], strides = [1, 1]} : vector<8x192xf32> to vector<8x64xf32>
    %132 = vector.extract_strided_slice %128 {offsets = [0, 64], sizes = [8, 64], strides = [1, 1]} : vector<8x192xf32> to vector<8x64xf32>
    %133 = vector.extract_strided_slice %128 {offsets = [0, 128], sizes = [8, 64], strides = [1, 1]} : vector<8x192xf32> to vector<8x64xf32>
    %134 = arith.mulf %132, %117 : vector<8x64xf32>
    %135 = arith.mulf %131, %130 : vector<8x64xf32>
    %136 = arith.addf %134, %135 : vector<8x64xf32>
    %137 = math.tanh %136 : vector<8x64xf32>
    %138 = arith.mulf %133, %137 : vector<8x64xf32>
    %139 = vector.extract_strided_slice %5 {offsets = [56, 0], sizes = [8, 256], strides = [1, 1]} : vector<64x256xf32> to vector<8x256xf32>
    %cst_21 = arith.constant dense<0.000000e+00> : vector<8x256xf32>
    %140 = tpu.matmul %138, %6, %cst_21 {dimension_numbers = #tpu.dot_dimension_numbers<[1], [0], [0], [1], [0, 0, 1, 1], [], []>} : vector<8x64xf32>, vector<64x256xf32>, vector<8x256xf32> -> vector<8x256xf32>
    %141 = arith.addf %139, %140 : vector<8x256xf32>
    %142 = vector.extract_strided_slice %141 {offsets = [0, 0], sizes = [8, 192], strides = [1, 1]} : vector<8x256xf32> to vector<8x192xf32>
    %143 = arith.negf %142 : vector<8x192xf32>
    %144 = math.exp %143 : vector<8x192xf32>
    %cst_22 = arith.constant 1.000000e+00 : f32
    %145 = vector.broadcast %cst_22 : f32 to vector<8x192xf32>
    %146 = arith.addf %145, %144 : vector<8x192xf32>
    %147 = arith.divf %145, %146 : vector<8x192xf32>
    %148 = vector.extract_strided_slice %141 {offsets = [0, 192], sizes = [8, 64], strides = [1, 1]} : vector<8x256xf32> to vector<8x64xf32>
    %149 = math.tanh %148 : vector<8x64xf32>
    %150 = vector.extract_strided_slice %147 {offsets = [0, 0], sizes = [8, 64], strides = [1, 1]} : vector<8x192xf32> to vector<8x64xf32>
    %151 = vector.extract_strided_slice %147 {offsets = [0, 64], sizes = [8, 64], strides = [1, 1]} : vector<8x192xf32> to vector<8x64xf32>
    %152 = vector.extract_strided_slice %147 {offsets = [0, 128], sizes = [8, 64], strides = [1, 1]} : vector<8x192xf32> to vector<8x64xf32>
    %153 = arith.mulf %151, %136 : vector<8x64xf32>
    %154 = arith.mulf %150, %149 : vector<8x64xf32>
    %155 = arith.addf %153, %154 : vector<8x64xf32>
    %156 = math.tanh %155 : vector<8x64xf32>
    %157 = arith.mulf %152, %156 : vector<8x64xf32>
    %158 = tpu.concatenate %24, %43, %62, %81, %100, %119, %138, %157 in 0 : vector<8x64xf32>, vector<8x64xf32>, vector<8x64xf32>, vector<8x64xf32>, vector<8x64xf32>, vector<8x64xf32>, vector<8x64xf32>, vector<8x64xf32> -> vector<64x64xf32>
    %159 = tpu.concatenate %157, %138, %119, %100, %81, %62, %43, %24 in 0 : vector<8x64xf32>, vector<8x64xf32>, vector<8x64xf32>, vector<8x64xf32>, vector<8x64xf32>, vector<8x64xf32>, vector<8x64xf32>, vector<8x64xf32> -> vector<64x64xf32>
    %c0_23 = arith.constant 0 : index
    %c0_24 = arith.constant 0 : index
    %160 = vector.load %arg4[%c0_23, %c0_24] : memref<64x256xf32, #tpu.memory_space<vmem>>, vector<64x256xf32>
    %cst_25 = arith.constant dense<0.000000e+00> : vector<64x256xf32>
    %161 = tpu.matmul %158, %160, %cst_25 {dimension_numbers = #tpu.dot_dimension_numbers<[1], [0], [0], [1], [0, 0, 1, 1], [], []>} : vector<64x64xf32>, vector<64x256xf32>, vector<64x256xf32> -> vector<64x256xf32>
    %c0_26 = arith.constant 0 : index
    %c0_27 = arith.constant 0 : index
    %162 = vector.load %arg5[%c0_26, %c0_27] : memref<64x256xf32, #tpu.memory_space<vmem>>, vector<64x256xf32>
    %cst_28 = arith.constant dense<0.000000e+00> : vector<64x256xf32>
    %163 = tpu.matmul %159, %162, %cst_28 {dimension_numbers = #tpu.dot_dimension_numbers<[1], [0], [0], [1], [0, 0, 1, 1], [], []>} : vector<64x64xf32>, vector<64x256xf32>, vector<64x256xf32> -> vector<64x256xf32>
    %164 = arith.addf %161, %163 : vector<64x256xf32>
    %c0_29 = arith.constant 0 : index
    %c0_30 = arith.constant 0 : index
    %165 = vector.load %arg6[%c0_29, %c0_30] : memref<1x256xf32, #tpu.memory_space<vmem>>, vector<1x256xf32>
    %166 = vector.broadcast %165 : vector<1x256xf32> to vector<64x256xf32>
    %167 = arith.addf %164, %166 : vector<64x256xf32>
    %c0_31 = arith.constant 0 : index
    %c0_32 = arith.constant 0 : index
    %168 = vector.load %arg7[%c0_31, %c0_32] : memref<64x256xf32, #tpu.memory_space<vmem>>, vector<64x256xf32>
    %cst_33 = arith.constant 0.000000e+00 : f32
    %169 = vector.broadcast %cst_33 : f32 to vector<8x64xf32>
    %170 = vector.extract_strided_slice %167 {offsets = [0, 0], sizes = [8, 256], strides = [1, 1]} : vector<64x256xf32> to vector<8x256xf32>
    %171 = vector.extract_strided_slice %170 {offsets = [0, 0], sizes = [8, 192], strides = [1, 1]} : vector<8x256xf32> to vector<8x192xf32>
    %172 = arith.negf %171 : vector<8x192xf32>
    %173 = math.exp %172 : vector<8x192xf32>
    %cst_34 = arith.constant 1.000000e+00 : f32
    %174 = vector.broadcast %cst_34 : f32 to vector<8x192xf32>
    %175 = arith.addf %174, %173 : vector<8x192xf32>
    %176 = arith.divf %174, %175 : vector<8x192xf32>
    %177 = vector.extract_strided_slice %170 {offsets = [0, 192], sizes = [8, 64], strides = [1, 1]} : vector<8x256xf32> to vector<8x64xf32>
    %178 = math.tanh %177 : vector<8x64xf32>
    %179 = vector.extract_strided_slice %176 {offsets = [0, 0], sizes = [8, 64], strides = [1, 1]} : vector<8x192xf32> to vector<8x64xf32>
    %180 = vector.extract_strided_slice %176 {offsets = [0, 64], sizes = [8, 64], strides = [1, 1]} : vector<8x192xf32> to vector<8x64xf32>
    %181 = vector.extract_strided_slice %176 {offsets = [0, 128], sizes = [8, 64], strides = [1, 1]} : vector<8x192xf32> to vector<8x64xf32>
    %182 = arith.mulf %180, %169 : vector<8x64xf32>
    %183 = arith.mulf %179, %178 : vector<8x64xf32>
    %184 = arith.addf %182, %183 : vector<8x64xf32>
    %185 = math.tanh %184 : vector<8x64xf32>
    %186 = arith.mulf %181, %185 : vector<8x64xf32>
    %187 = vector.extract_strided_slice %167 {offsets = [8, 0], sizes = [8, 256], strides = [1, 1]} : vector<64x256xf32> to vector<8x256xf32>
    %cst_35 = arith.constant dense<0.000000e+00> : vector<8x256xf32>
    %188 = tpu.matmul %186, %168, %cst_35 {dimension_numbers = #tpu.dot_dimension_numbers<[1], [0], [0], [1], [0, 0, 1, 1], [], []>} : vector<8x64xf32>, vector<64x256xf32>, vector<8x256xf32> -> vector<8x256xf32>
    %189 = arith.addf %187, %188 : vector<8x256xf32>
    %190 = vector.extract_strided_slice %189 {offsets = [0, 0], sizes = [8, 192], strides = [1, 1]} : vector<8x256xf32> to vector<8x192xf32>
    %191 = arith.negf %190 : vector<8x192xf32>
    %192 = math.exp %191 : vector<8x192xf32>
    %cst_36 = arith.constant 1.000000e+00 : f32
    %193 = vector.broadcast %cst_36 : f32 to vector<8x192xf32>
    %194 = arith.addf %193, %192 : vector<8x192xf32>
    %195 = arith.divf %193, %194 : vector<8x192xf32>
    %196 = vector.extract_strided_slice %189 {offsets = [0, 192], sizes = [8, 64], strides = [1, 1]} : vector<8x256xf32> to vector<8x64xf32>
    %197 = math.tanh %196 : vector<8x64xf32>
    %198 = vector.extract_strided_slice %195 {offsets = [0, 0], sizes = [8, 64], strides = [1, 1]} : vector<8x192xf32> to vector<8x64xf32>
    %199 = vector.extract_strided_slice %195 {offsets = [0, 64], sizes = [8, 64], strides = [1, 1]} : vector<8x192xf32> to vector<8x64xf32>
    %200 = vector.extract_strided_slice %195 {offsets = [0, 128], sizes = [8, 64], strides = [1, 1]} : vector<8x192xf32> to vector<8x64xf32>
    %201 = arith.mulf %199, %184 : vector<8x64xf32>
    %202 = arith.mulf %198, %197 : vector<8x64xf32>
    %203 = arith.addf %201, %202 : vector<8x64xf32>
    %204 = math.tanh %203 : vector<8x64xf32>
    %205 = arith.mulf %200, %204 : vector<8x64xf32>
    %206 = arith.addf %186, %205 : vector<8x64xf32>
    %207 = arith.maximumf %186, %205 : vector<8x64xf32>
    %208 = vector.extract_strided_slice %167 {offsets = [16, 0], sizes = [8, 256], strides = [1, 1]} : vector<64x256xf32> to vector<8x256xf32>
    %cst_37 = arith.constant dense<0.000000e+00> : vector<8x256xf32>
    %209 = tpu.matmul %205, %168, %cst_37 {dimension_numbers = #tpu.dot_dimension_numbers<[1], [0], [0], [1], [0, 0, 1, 1], [], []>} : vector<8x64xf32>, vector<64x256xf32>, vector<8x256xf32> -> vector<8x256xf32>
    %210 = arith.addf %208, %209 : vector<8x256xf32>
    %211 = vector.extract_strided_slice %210 {offsets = [0, 0], sizes = [8, 192], strides = [1, 1]} : vector<8x256xf32> to vector<8x192xf32>
    %212 = arith.negf %211 : vector<8x192xf32>
    %213 = math.exp %212 : vector<8x192xf32>
    %cst_38 = arith.constant 1.000000e+00 : f32
    %214 = vector.broadcast %cst_38 : f32 to vector<8x192xf32>
    %215 = arith.addf %214, %213 : vector<8x192xf32>
    %216 = arith.divf %214, %215 : vector<8x192xf32>
    %217 = vector.extract_strided_slice %210 {offsets = [0, 192], sizes = [8, 64], strides = [1, 1]} : vector<8x256xf32> to vector<8x64xf32>
    %218 = math.tanh %217 : vector<8x64xf32>
    %219 = vector.extract_strided_slice %216 {offsets = [0, 0], sizes = [8, 64], strides = [1, 1]} : vector<8x192xf32> to vector<8x64xf32>
    %220 = vector.extract_strided_slice %216 {offsets = [0, 64], sizes = [8, 64], strides = [1, 1]} : vector<8x192xf32> to vector<8x64xf32>
    %221 = vector.extract_strided_slice %216 {offsets = [0, 128], sizes = [8, 64], strides = [1, 1]} : vector<8x192xf32> to vector<8x64xf32>
    %222 = arith.mulf %220, %203 : vector<8x64xf32>
    %223 = arith.mulf %219, %218 : vector<8x64xf32>
    %224 = arith.addf %222, %223 : vector<8x64xf32>
    %225 = math.tanh %224 : vector<8x64xf32>
    %226 = arith.mulf %221, %225 : vector<8x64xf32>
    %227 = arith.addf %206, %226 : vector<8x64xf32>
    %228 = arith.maximumf %207, %226 : vector<8x64xf32>
    %229 = vector.extract_strided_slice %167 {offsets = [24, 0], sizes = [8, 256], strides = [1, 1]} : vector<64x256xf32> to vector<8x256xf32>
    %cst_39 = arith.constant dense<0.000000e+00> : vector<8x256xf32>
    %230 = tpu.matmul %226, %168, %cst_39 {dimension_numbers = #tpu.dot_dimension_numbers<[1], [0], [0], [1], [0, 0, 1, 1], [], []>} : vector<8x64xf32>, vector<64x256xf32>, vector<8x256xf32> -> vector<8x256xf32>
    %231 = arith.addf %229, %230 : vector<8x256xf32>
    %232 = vector.extract_strided_slice %231 {offsets = [0, 0], sizes = [8, 192], strides = [1, 1]} : vector<8x256xf32> to vector<8x192xf32>
    %233 = arith.negf %232 : vector<8x192xf32>
    %234 = math.exp %233 : vector<8x192xf32>
    %cst_40 = arith.constant 1.000000e+00 : f32
    %235 = vector.broadcast %cst_40 : f32 to vector<8x192xf32>
    %236 = arith.addf %235, %234 : vector<8x192xf32>
    %237 = arith.divf %235, %236 : vector<8x192xf32>
    %238 = vector.extract_strided_slice %231 {offsets = [0, 192], sizes = [8, 64], strides = [1, 1]} : vector<8x256xf32> to vector<8x64xf32>
    %239 = math.tanh %238 : vector<8x64xf32>
    %240 = vector.extract_strided_slice %237 {offsets = [0, 0], sizes = [8, 64], strides = [1, 1]} : vector<8x192xf32> to vector<8x64xf32>
    %241 = vector.extract_strided_slice %237 {offsets = [0, 64], sizes = [8, 64], strides = [1, 1]} : vector<8x192xf32> to vector<8x64xf32>
    %242 = vector.extract_strided_slice %237 {offsets = [0, 128], sizes = [8, 64], strides = [1, 1]} : vector<8x192xf32> to vector<8x64xf32>
    %243 = arith.mulf %241, %224 : vector<8x64xf32>
    %244 = arith.mulf %240, %239 : vector<8x64xf32>
    %245 = arith.addf %243, %244 : vector<8x64xf32>
    %246 = math.tanh %245 : vector<8x64xf32>
    %247 = arith.mulf %242, %246 : vector<8x64xf32>
    %248 = arith.addf %227, %247 : vector<8x64xf32>
    %249 = arith.maximumf %228, %247 : vector<8x64xf32>
    %250 = vector.extract_strided_slice %167 {offsets = [32, 0], sizes = [8, 256], strides = [1, 1]} : vector<64x256xf32> to vector<8x256xf32>
    %cst_41 = arith.constant dense<0.000000e+00> : vector<8x256xf32>
    %251 = tpu.matmul %247, %168, %cst_41 {dimension_numbers = #tpu.dot_dimension_numbers<[1], [0], [0], [1], [0, 0, 1, 1], [], []>} : vector<8x64xf32>, vector<64x256xf32>, vector<8x256xf32> -> vector<8x256xf32>
    %252 = arith.addf %250, %251 : vector<8x256xf32>
    %253 = vector.extract_strided_slice %252 {offsets = [0, 0], sizes = [8, 192], strides = [1, 1]} : vector<8x256xf32> to vector<8x192xf32>
    %254 = arith.negf %253 : vector<8x192xf32>
    %255 = math.exp %254 : vector<8x192xf32>
    %cst_42 = arith.constant 1.000000e+00 : f32
    %256 = vector.broadcast %cst_42 : f32 to vector<8x192xf32>
    %257 = arith.addf %256, %255 : vector<8x192xf32>
    %258 = arith.divf %256, %257 : vector<8x192xf32>
    %259 = vector.extract_strided_slice %252 {offsets = [0, 192], sizes = [8, 64], strides = [1, 1]} : vector<8x256xf32> to vector<8x64xf32>
    %260 = math.tanh %259 : vector<8x64xf32>
    %261 = vector.extract_strided_slice %258 {offsets = [0, 0], sizes = [8, 64], strides = [1, 1]} : vector<8x192xf32> to vector<8x64xf32>
    %262 = vector.extract_strided_slice %258 {offsets = [0, 64], sizes = [8, 64], strides = [1, 1]} : vector<8x192xf32> to vector<8x64xf32>
    %263 = vector.extract_strided_slice %258 {offsets = [0, 128], sizes = [8, 64], strides = [1, 1]} : vector<8x192xf32> to vector<8x64xf32>
    %264 = arith.mulf %262, %245 : vector<8x64xf32>
    %265 = arith.mulf %261, %260 : vector<8x64xf32>
    %266 = arith.addf %264, %265 : vector<8x64xf32>
    %267 = math.tanh %266 : vector<8x64xf32>
    %268 = arith.mulf %263, %267 : vector<8x64xf32>
    %269 = arith.addf %248, %268 : vector<8x64xf32>
    %270 = arith.maximumf %249, %268 : vector<8x64xf32>
    %271 = vector.extract_strided_slice %167 {offsets = [40, 0], sizes = [8, 256], strides = [1, 1]} : vector<64x256xf32> to vector<8x256xf32>
    %cst_43 = arith.constant dense<0.000000e+00> : vector<8x256xf32>
    %272 = tpu.matmul %268, %168, %cst_43 {dimension_numbers = #tpu.dot_dimension_numbers<[1], [0], [0], [1], [0, 0, 1, 1], [], []>} : vector<8x64xf32>, vector<64x256xf32>, vector<8x256xf32> -> vector<8x256xf32>
    %273 = arith.addf %271, %272 : vector<8x256xf32>
    %274 = vector.extract_strided_slice %273 {offsets = [0, 0], sizes = [8, 192], strides = [1, 1]} : vector<8x256xf32> to vector<8x192xf32>
    %275 = arith.negf %274 : vector<8x192xf32>
    %276 = math.exp %275 : vector<8x192xf32>
    %cst_44 = arith.constant 1.000000e+00 : f32
    %277 = vector.broadcast %cst_44 : f32 to vector<8x192xf32>
    %278 = arith.addf %277, %276 : vector<8x192xf32>
    %279 = arith.divf %277, %278 : vector<8x192xf32>
    %280 = vector.extract_strided_slice %273 {offsets = [0, 192], sizes = [8, 64], strides = [1, 1]} : vector<8x256xf32> to vector<8x64xf32>
    %281 = math.tanh %280 : vector<8x64xf32>
    %282 = vector.extract_strided_slice %279 {offsets = [0, 0], sizes = [8, 64], strides = [1, 1]} : vector<8x192xf32> to vector<8x64xf32>
    %283 = vector.extract_strided_slice %279 {offsets = [0, 64], sizes = [8, 64], strides = [1, 1]} : vector<8x192xf32> to vector<8x64xf32>
    %284 = vector.extract_strided_slice %279 {offsets = [0, 128], sizes = [8, 64], strides = [1, 1]} : vector<8x192xf32> to vector<8x64xf32>
    %285 = arith.mulf %283, %266 : vector<8x64xf32>
    %286 = arith.mulf %282, %281 : vector<8x64xf32>
    %287 = arith.addf %285, %286 : vector<8x64xf32>
    %288 = math.tanh %287 : vector<8x64xf32>
    %289 = arith.mulf %284, %288 : vector<8x64xf32>
    %290 = arith.addf %269, %289 : vector<8x64xf32>
    %291 = arith.maximumf %270, %289 : vector<8x64xf32>
    %292 = vector.extract_strided_slice %167 {offsets = [48, 0], sizes = [8, 256], strides = [1, 1]} : vector<64x256xf32> to vector<8x256xf32>
    %cst_45 = arith.constant dense<0.000000e+00> : vector<8x256xf32>
    %293 = tpu.matmul %289, %168, %cst_45 {dimension_numbers = #tpu.dot_dimension_numbers<[1], [0], [0], [1], [0, 0, 1, 1], [], []>} : vector<8x64xf32>, vector<64x256xf32>, vector<8x256xf32> -> vector<8x256xf32>
    %294 = arith.addf %292, %293 : vector<8x256xf32>
    %295 = vector.extract_strided_slice %294 {offsets = [0, 0], sizes = [8, 192], strides = [1, 1]} : vector<8x256xf32> to vector<8x192xf32>
    %296 = arith.negf %295 : vector<8x192xf32>
    %297 = math.exp %296 : vector<8x192xf32>
    %cst_46 = arith.constant 1.000000e+00 : f32
    %298 = vector.broadcast %cst_46 : f32 to vector<8x192xf32>
    %299 = arith.addf %298, %297 : vector<8x192xf32>
    %300 = arith.divf %298, %299 : vector<8x192xf32>
    %301 = vector.extract_strided_slice %294 {offsets = [0, 192], sizes = [8, 64], strides = [1, 1]} : vector<8x256xf32> to vector<8x64xf32>
    %302 = math.tanh %301 : vector<8x64xf32>
    %303 = vector.extract_strided_slice %300 {offsets = [0, 0], sizes = [8, 64], strides = [1, 1]} : vector<8x192xf32> to vector<8x64xf32>
    %304 = vector.extract_strided_slice %300 {offsets = [0, 64], sizes = [8, 64], strides = [1, 1]} : vector<8x192xf32> to vector<8x64xf32>
    %305 = vector.extract_strided_slice %300 {offsets = [0, 128], sizes = [8, 64], strides = [1, 1]} : vector<8x192xf32> to vector<8x64xf32>
    %306 = arith.mulf %304, %287 : vector<8x64xf32>
    %307 = arith.mulf %303, %302 : vector<8x64xf32>
    %308 = arith.addf %306, %307 : vector<8x64xf32>
    %309 = math.tanh %308 : vector<8x64xf32>
    %310 = arith.mulf %305, %309 : vector<8x64xf32>
    %311 = arith.addf %290, %310 : vector<8x64xf32>
    %312 = arith.maximumf %291, %310 : vector<8x64xf32>
    %313 = vector.extract_strided_slice %167 {offsets = [56, 0], sizes = [8, 256], strides = [1, 1]} : vector<64x256xf32> to vector<8x256xf32>
    %cst_47 = arith.constant dense<0.000000e+00> : vector<8x256xf32>
    %314 = tpu.matmul %310, %168, %cst_47 {dimension_numbers = #tpu.dot_dimension_numbers<[1], [0], [0], [1], [0, 0, 1, 1], [], []>} : vector<8x64xf32>, vector<64x256xf32>, vector<8x256xf32> -> vector<8x256xf32>
    %315 = arith.addf %313, %314 : vector<8x256xf32>
    %316 = vector.extract_strided_slice %315 {offsets = [0, 0], sizes = [8, 192], strides = [1, 1]} : vector<8x256xf32> to vector<8x192xf32>
    %317 = arith.negf %316 : vector<8x192xf32>
    %318 = math.exp %317 : vector<8x192xf32>
    %cst_48 = arith.constant 1.000000e+00 : f32
    %319 = vector.broadcast %cst_48 : f32 to vector<8x192xf32>
    %320 = arith.addf %319, %318 : vector<8x192xf32>
    %321 = arith.divf %319, %320 : vector<8x192xf32>
    %322 = vector.extract_strided_slice %315 {offsets = [0, 192], sizes = [8, 64], strides = [1, 1]} : vector<8x256xf32> to vector<8x64xf32>
    %323 = math.tanh %322 : vector<8x64xf32>
    %324 = vector.extract_strided_slice %321 {offsets = [0, 0], sizes = [8, 64], strides = [1, 1]} : vector<8x192xf32> to vector<8x64xf32>
    %325 = vector.extract_strided_slice %321 {offsets = [0, 64], sizes = [8, 64], strides = [1, 1]} : vector<8x192xf32> to vector<8x64xf32>
    %326 = vector.extract_strided_slice %321 {offsets = [0, 128], sizes = [8, 64], strides = [1, 1]} : vector<8x192xf32> to vector<8x64xf32>
    %327 = arith.mulf %325, %308 : vector<8x64xf32>
    %328 = arith.mulf %324, %323 : vector<8x64xf32>
    %329 = arith.addf %327, %328 : vector<8x64xf32>
    %330 = math.tanh %329 : vector<8x64xf32>
    %331 = arith.mulf %326, %330 : vector<8x64xf32>
    %332 = arith.addf %311, %331 : vector<8x64xf32>
    %333 = arith.maximumf %312, %331 : vector<8x64xf32>
    %cst_49 = arith.constant 1.250000e-01 : f32
    %334 = vector.broadcast %cst_49 : f32 to vector<8x64xf32>
    %335 = arith.mulf %332, %334 : vector<8x64xf32>
    %c0_50 = arith.constant 0 : index
    %c0_51 = arith.constant 0 : index
    %336 = vector.load %arg8[%c0_50, %c0_51] : memref<64x4xf32, #tpu.memory_space<vmem>>, vector<64x4xf32>
    %cst_52 = arith.constant dense<0.000000e+00> : vector<8x4xf32>
    %337 = tpu.matmul %335, %336, %cst_52 {dimension_numbers = #tpu.dot_dimension_numbers<[1], [0], [0], [1], [0, 0, 1, 1], [], []>} : vector<8x64xf32>, vector<64x4xf32>, vector<8x4xf32> -> vector<8x4xf32>
    %c0_53 = arith.constant 0 : index
    %c0_54 = arith.constant 0 : index
    %338 = vector.load %arg9[%c0_53, %c0_54] : memref<64x4xf32, #tpu.memory_space<vmem>>, vector<64x4xf32>
    %cst_55 = arith.constant dense<0.000000e+00> : vector<8x4xf32>
    %339 = tpu.matmul %333, %338, %cst_55 {dimension_numbers = #tpu.dot_dimension_numbers<[1], [0], [0], [1], [0, 0, 1, 1], [], []>} : vector<8x64xf32>, vector<64x4xf32>, vector<8x4xf32> -> vector<8x4xf32>
    %340 = arith.addf %337, %339 : vector<8x4xf32>
    %c0_56 = arith.constant 0 : index
    %c0_57 = arith.constant 0 : index
    %341 = vector.load %arg10[%c0_56, %c0_57] : memref<1x4xf32, #tpu.memory_space<vmem>>, vector<1x4xf32>
    %342 = vector.broadcast %341 : vector<1x4xf32> to vector<8x4xf32>
    %343 = arith.addf %340, %342 : vector<8x4xf32>
    %cst_58 = arith.constant dense<0xFF800000> : vector<8xf32>
    %344 = vector.multi_reduction <maximumf>, %343, %cst_58 [1] : vector<8x4xf32> to vector<8xf32>
    %345 = vector.shape_cast %344 : vector<8xf32> to vector<8x1xf32>
    %346 = vector.broadcast %345 : vector<8x1xf32> to vector<8x4xf32>
    %347 = arith.subf %343, %346 : vector<8x4xf32>
    %348 = math.exp %347 : vector<8x4xf32>
    %cst_59 = arith.constant dense<0.000000e+00> : vector<8xf32>
    %349 = vector.multi_reduction <add>, %348, %cst_59 [1] : vector<8x4xf32> to vector<8xf32>
    %350 = vector.shape_cast %349 : vector<8xf32> to vector<8x1xf32>
    %351 = math.log %350 : vector<8x1xf32>
    %352 = vector.broadcast %351 : vector<8x1xf32> to vector<8x4xf32>
    %353 = arith.subf %347, %352 : vector<8x4xf32>
    %c0_60 = arith.constant 0 : index
    %c0_61 = arith.constant 0 : index
    %354 = vector.load %arg11[%c0_60, %c0_61] : memref<8x4xf32, #tpu.memory_space<vmem>>, vector<8x4xf32>
    tpu.vector_store %arg11[%c0_60, %c0_61], %353 {strides = array<i32>} : memref<8x4xf32, #tpu.memory_space<vmem>>, vector<8x4xf32>,
    return
  }
}

</mosaic_0001>

<bundles_post_ra>
// kernel: tpu_custom_call.1
= control target key start
LH: loop header
LB: loop body
LE: loop exit
PB: predicated region body
PF: predicated region fallthrough
CT: control target
= control target key end

     0   :  { %16 = vsyncpa [#allocation3], 0  ;;  %s3453_s0 = inlined_call_operand.hbm [shape: f32[64,64], index: 0, kind: input, shape index: {}]   ;;  %s3454_s1 = inlined_call_operand.vmem [shape: f32[64,256], index: 1, kind: input, shape index: {}]   ;;  %s3455_s2 = inlined_call_operand.vmem [shape: f32[1,256], index: 2, kind: input, shape index: {}]   ;;  %s3456_s3 = inlined_call_operand.hbm [shape: f32[64,256], index: 3, kind: input, shape index: {}]   ;;  %s3457_s4 = inlined_call_operand.hbm [shape: f32[64,256], index: 4, kind: input, shape index: {}]   ;;  %s3458_s5 = inlined_call_operand.hbm [shape: f32[64,256], index: 5, kind: input, shape index: {}]   ;;  %s3459_s6 = inlined_call_operand.vmem [shape: f32[1,256], index: 6, kind: input, shape index: {}]   ;;  %s3460_s7 = inlined_call_operand.hbm [shape: f32[64,256], index: 7, kind: input, shape index: {}]   ;;  %s3461_s8 = inlined_call_operand.vmem [shape: f32[64,4], index: 8, kind: input, shape index: {}]   ;;  %s3462_s9 = inlined_call_operand.vmem [shape: f32[64,4], index: 9, kind: input, shape index: {}]   ;;  %s3463_s10 = inlined_call_operand.vmem [shape: f32[1,4], index: 10, kind: input, shape index: {}]   ;;  %s3464_s11 = inlined_call_operand.vmem [shape: f32[8,4], index: 11, kind: output, shape index: {}]  }
   0x1   :  { %17 = vsyncpa [#allocation5], 0  ;;  %s40_s19 = sshll.u32 %s3456_s3, 4  ;;  %s41_s19 = int_to_ptr.hbm [resolvable:$true] %s40_s19 }
   0x2   :  { %18 = vsyncpa [#allocation8], 0  ;;  %s2578_s20 = smov [#allocation4]   ;;  %s66_s24 = sshll.u32 %s3458_s5, 4  ;;  %s67_s24 = int_to_ptr.hbm [resolvable:$true] %s66_s24 }
   0x3   :  { %s42_s21 = sshll.u32 %s2578_s20, 4  ;;  %s2579_s25 = smov 256   ;;  %s43_s21 = int_to_ptr.vmem [resolvable:$true] %s42_s21 }
   0x4   :  { %s2580_s26 = smov 16   ;;  %s2581_s27 = smov [#allocation7]  }
   0x5   :  { %48 = dma.hbm_to_vmem [thread:$0]  %s41_s19, 2048, %s43_s21, [#allocation5], %s2579_s25, %s2579_s25, %s2580_s26  }
   0x6   :  { %s68_s28 = sshll.u32 %s2581_s27, 4  ;;  %s23_s30 = sshll.u32 %s3453_s0, 4  ;;  %s69_s28 = int_to_ptr.vmem [resolvable:$true] %s68_s28  ;;  %s24_s30 = int_to_ptr.hbm [resolvable:$true] %s23_s30 }
   0x7   :  { %74 = dma.hbm_to_vmem [thread:$0]  %s67_s24, 2048, %s69_s28, [#allocation8], %s2579_s25, %s2579_s25, %s2580_s26  }
   0x8   :  { %s2582_s5 = smov [#allocation2]   ;;  %s53_s15 = sshll.u32 %s3457_s4, 4  ;;  %s54_s15 = int_to_ptr.hbm [resolvable:$true] %s53_s15 }
   0x9   :  { %s25_s12 = sshll.u32 %s2582_s5, 4  ;;  %s2583_s16 = smov 128   ;;  %s26_s12 = int_to_ptr.vmem [resolvable:$true] %s25_s12 }
   0xa   :  { %s2584_s17 = smov 8   ;;  %s2585_s18 = smov [#allocation6]  }
   0xb   :  { %31 = dma.hbm_to_vmem [thread:$0]  %s24_s30, 1024, %s26_s12, [#allocation3], %s2583_s16, %s2583_s16, %s2584_s17  }
   0xc   :  { %s55_s19 = sshll.u32 %s2585_s18, 4  ;;  %s81_s21 = sshll.u32 %s3460_s7, 4  ;;  %s56_s19 = int_to_ptr.vmem [resolvable:$true] %s55_s19  ;;  %s82_s21 = int_to_ptr.hbm [resolvable:$true] %s81_s21 }
   0xd   :  { %61 = dma.hbm_to_vmem [thread:$0]  %s54_s15, 2048, %s56_s19, [#allocation5], %s2579_s25, %s2579_s25, %s2580_s26  }
   0xe   :  { %s2586_s22 = smov [#allocation9]  }
   0xf   :  { %s83_s23 = sshll.u32 %s2586_s22, 4  ;;  %s84_s23 = int_to_ptr.vmem [resolvable:$true] %s83_s23 }
  0x10   :  { %89 = dma.hbm_to_vmem [thread:$0]  %s82_s21, 2048, %s84_s23, [#allocation8], %s2579_s25, %s2579_s25, %s2580_s26  }
  0x11   :  { %2572 = dma.done.wait [#allocation3], 1024  }
  0x12   :  { %2573 = vsyncadd [#allocation3], 4294966272 }
  0x13   :  { %2574 = dma.done.wait [#allocation5], 4096  }
  0x14   :  { %2575 = vsyncadd [#allocation5], 4294963200 }
  0x15   :  { %2576 = dma.done.wait [#allocation8], 4096  }
  0x16   :  { %2577 = vsyncadd [#allocation8], 4294963200  ;;  %v139_v0 = vld [vmem:[%s3454_s1 + $0x78] sm:$0xff]  ;;  %v137_v1 = vld [vmem:[%s3454_s1 + $0x68] sm:$0xff]  ;;  %vm146_vm0 = vcmask 523264  }
  0x17   :  { %220 = vmatpush.msra.mxu1 %v139_v0  ;;  %v135_v2 = vld [vmem:[%s3454_s1 + $0x58] sm:$0xff]  ;;  %v138_v3 = vld [vmem:[%s3454_s1 + $0x70] sm:$0xff]  ;;  %v136_v4 = vld [vmem:[%s3454_s1 + $0x60] sm:$0xff] }
  0x18   :  { %v133_v5 = vld [vmem:[%s3454_s1 + $0x48] sm:$0xff]  ;;  %179 = vmatpush.msra.mxu0 %v138_v3  ;;  %v134_v6 = vld [vmem:[%s3454_s1 + $0x50] sm:$0xff]  ;;  %v131_v7 = vld [vmem:[%s3454_s1 + $0x38] sm:$0xff] }
  0x19   :  { %221 = vmatpush.msra.mxu1 %v137_v1  ;;  %v132_v8 = vld [vmem:[%s3454_s1 + $0x40] sm:$0xff]  ;;  %v129_v9 = vld [vmem:[%s3454_s1 + $0x28] sm:$0xff]  ;;  %v130_v10 = vld [vmem:[%s3454_s1 + $0x30] sm:$0xff] }
  0x1a   :  { %180 = vmatpush.msra.mxu0 %v136_v4  ;;  %v127_v11 = vld [vmem:[%s3454_s1 + $0x18] sm:$0xff]  ;;  %v128_v12 = vld [vmem:[%s3454_s1 + $0x20] sm:$0xff]  ;;  %v125_v13 = vld [vmem:[%s3454_s1 + $0x8] sm:$0xff] }
  0x1b   :  { %222 = vmatpush.msra.mxu1 %v135_v2  ;;  %v116_v14 = vld [vmem:[#allocation2] sm:$0xff]  ;;  %v126_v15 = vld [vmem:[%s3454_s1 + $0x10] sm:$0xff]  ;;  %v2741_v41 = vld [vmem:[#allocation4 + $0x78] sm:$0xff] }
  0x1c   :  { %181 = vmatpush.msra.mxu0 %v134_v6  ;;  %v124_v16 = vld [vmem:[%s3454_s1] sm:$0xff]  ;;  %s2587_s1 = smov 64   ;;  %v2739_v40 = vld [vmem:[#allocation4 + $0x70] sm:$0xff]  ;;  %356 = vmatpush.msra.mxu3 %v2741_v41  ;;  %v2747_v43 = vld [vmem:[#allocation4 + $0x68] sm:$0xff] }
  0x1d   :  { %223 = vmatpush.msra.mxu1 %v133_v5  ;;  %v140_v17 = vld [vmem:[%s3455_s2] sm:$0x3]  ;;  %336 = vmatpush.msra.mxu2 %v2739_v40  ;;  %v2749_v44 = vld [vmem:[#allocation4 + $0x50] sm:$0xff]  ;;  %v2751_v45 = vld [vmem:[#allocation4 + $0x58] sm:$0xff] }
  0x1e   :  { %182 = vmatpush.msra.mxu0 %v132_v8  ;;  %v2728_v18 = vperm.slane %v140_v17, 1  ;;  %v2735_v22 = vperm.slane %v140_v17, 0  ;;  %v2743_v42 = vld [vmem:[#allocation4 + $0x60] sm:$0xff]  ;;  %357 = vmatpush.msra.mxu3 %v2747_v43  ;;  %v2759_v47 = vld [vmem:[#allocation4 + $0x48] sm:$0xff]  ;;  %v2765_v48 = vld [vmem:[#allocation4 + $0x30] sm:$0xff] }
  0x1f   :  { %224 = vmatpush.msra.mxu1 %v131_v7  ;;  %337 = vmatpush.msra.mxu2 %v2743_v42  ;;  %v2757_v46 = vld [vmem:[#allocation4 + $0x40] sm:$0xff]  ;;  %v2767_v49 = vld [vmem:[#allocation4 + $0x38] sm:$0xff]  ;;  %v2775_v51 = vld [vmem:[#allocation4 + $0x28] sm:$0xff] }
  0x20   :  { %183 = vmatpush.msra.mxu0 %v130_v10  ;;  %358 = vmatpush.msra.mxu3 %v2751_v45  ;;  %v2773_v50 = vld [vmem:[#allocation4 + $0x20] sm:$0xff]  ;;  %v2781_v52 = vld [vmem:[#allocation4 + $0x10] sm:$0xff]  ;;  %v2783_v53 = vld [vmem:[#allocation4 + $0x18] sm:$0xff] }
  0x21   :  { %225 = vmatpush.msra.mxu1 %v129_v9  ;;  %338 = vmatpush.msra.mxu2 %v2749_v44  ;;  %v2800_v61 = vld [vmem:[#allocation4] sm:$0xff]  ;;  %v2802_v62 = vld [vmem:[#allocation4 + $0x8] sm:$0xff] }
  0x22   :  { %184 = vmatpush.msra.mxu0 %v128_v12  ;;  %359 = vmatpush.msra.mxu3 %v2759_v47  ;;  %v117_v63 = vld [vmem:[#allocation2 + $0x8] sm:$0xff] }
  0x23   :  { %226 = vmatpush.msra.mxu1 %v127_v11  ;;  %339 = vmatpush.msra.mxu2 %v2757_v46 }
  0x24   :  { %185 = vmatpush.msra.mxu0 %v126_v15  ;;  %360 = vmatpush.msra.mxu3 %v2767_v49 }
  0x25   :  { %227 = vmatpush.msra.mxu1 %v125_v13  ;;  %340 = vmatpush.msra.mxu2 %v2765_v48 }
  0x26   :  { %2143 = vmatmul.msk.f32.vlgmr.msra.gmra.mxu1 %vm146_vm0, %v116_v14  ;;  %186 = vmatpush.msra.mxu0 %v124_v16 }
  0x27   :  { %2135 = vmatmul.msk.f32.vlgmr.msra.gmra.mxu0 %vm146_vm0, %v116_v14  ;;  %760 = vmatpush.msrb.mxu1 %v2741_v41 }
  0x28   :  { %740 = vmatpush.msrb.mxu0 %v2739_v40  ;;  %341 = vmatpush.msra.mxu2 %v2773_v50 }
  0x29   :  { %761 = vmatpush.msrb.mxu1 %v2747_v43  ;;  %361 = vmatpush.msra.mxu3 %v2775_v51 }
  0x2a   :  { %741 = vmatpush.msrb.mxu0 %v2743_v42  ;;  %342 = vmatpush.msra.mxu2 %v2781_v52 }
  0x2b   :  { %762 = vmatpush.msrb.mxu1 %v2751_v45  ;;  %362 = vmatpush.msra.mxu3 %v2783_v53 }
  0x2c   :  { %742 = vmatpush.msrb.mxu0 %v2749_v44  ;;  %343 = vmatpush.msra.mxu2 %v2800_v61 }
  0x2d   :  { %763 = vmatpush.msrb.mxu1 %v2759_v47  ;;  %363 = vmatpush.msra.mxu3 %v2802_v62 }
  0x2e   :  { %743 = vmatpush.msrb.mxu0 %v2757_v46  ;;  %437 = vmatpush.msrb.mxu2 %v2739_v40 }
  0x2f   :  { %764 = vmatpush.msrb.mxu1 %v2767_v49  ;;  %457 = vmatpush.msrb.mxu3 %v2741_v41 }
  0x30   :  { %744 = vmatpush.msrb.mxu0 %v2765_v48  ;;  %2144 = vmatmul.msk.f32.gmra.mxu1 %vm146_vm0, %v117_v63 }
  0x31   :  { %765 = vmatpush.msrb.mxu1 %v2775_v51  ;;  %2136 = vmatmul.msk.f32.gmra.mxu0 %vm146_vm0, %v117_v63 }
  0x32   :  { %745 = vmatpush.msrb.mxu0 %v2773_v50  ;;  %438 = vmatpush.msrb.mxu2 %v2743_v42 }
  0x33   :  { %766 = vmatpush.msrb.mxu1 %v2783_v53  ;;  %458 = vmatpush.msrb.mxu3 %v2747_v43 }
  0x34   :  { %746 = vmatpush.msrb.mxu0 %v2781_v52  ;;  %439 = vmatpush.msrb.mxu2 %v2749_v44 }
  0x35   :  { %767 = vmatpush.msrb.mxu1 %v2802_v62  ;;  %459 = vmatpush.msrb.mxu3 %v2751_v45 }
  0x36   :  { %747 = vmatpush.msrb.mxu0 %v2800_v61  ;;  %440 = vmatpush.msrb.mxu2 %v2757_v46 }
  0x37   :  { %962 = vmatpush.msra.mxu1 %v2741_v41  ;;  %460 = vmatpush.msrb.mxu3 %v2759_v47 }
  0x38   :  { %942 = vmatpush.msra.mxu0 %v2739_v40  ;;  %441 = vmatpush.msrb.mxu2 %v2765_v48 }
  0x39   :  { %963 = vmatpush.msra.mxu1 %v2747_v43  ;;  %461 = vmatpush.msrb.mxu3 %v2767_v49 }
  0x3a   :  { %943 = vmatpush.msra.mxu0 %v2743_v42  ;;  %442 = vmatpush.msrb.mxu2 %v2773_v50 }
  0x3b   :  { %964 = vmatpush.msra.mxu1 %v2751_v45  ;;  %462 = vmatpush.msrb.mxu3 %v2775_v51 }
  0x3c   :  { %944 = vmatpush.msra.mxu0 %v2749_v44  ;;  %443 = vmatpush.msrb.mxu2 %v2781_v52 }
  0x3d   :  { %965 = vmatpush.msra.mxu1 %v2759_v47  ;;  %463 = vmatpush.msrb.mxu3 %v2783_v53 }
  0x3e   :  { %945 = vmatpush.msra.mxu0 %v2757_v46  ;;  %444 = vmatpush.msrb.mxu2 %v2800_v61 }
  0x3f   :  { %966 = vmatpush.msra.mxu1 %v2767_v49  ;;  %464 = vmatpush.msrb.mxu3 %v2802_v62 }
  0x40   :  { %946 = vmatpush.msra.mxu0 %v2765_v48 }
  0x41   :  { %967 = vmatpush.msra.mxu1 %v2775_v51 }
  0x42   :  { %947 = vmatpush.msra.mxu0 %v2773_v50 }
  0x43   :  { %968 = vmatpush.msra.mxu1 %v2783_v53 }
  0x44   :  { %948 = vmatpush.msra.mxu0 %v2781_v52 }
  0x45   :  { %969 = vmatpush.msra.mxu1 %v2802_v62 }
  0x46   :  { %949 = vmatpush.msra.mxu0 %v2800_v61 }
  0xa3   :  { %v229_v19 = vpop.f32.mrf.mxu1 }
  0xa4   :  { %v2731_v20 = vadd.f32 %v229_v19, %v2728_v18  ;;  %v188_v23 = vpop.f32.mrf.mxu0 }
  0xa5   :  { %v189_v24 = vadd.f32 %v188_v23, %v2735_v22 }
  0xa6   :  { %2256 = vtanh.f32 %v2731_v20  ;;  %v2152_v58 = vmul.f32 -1.442695, %v2731_v20 }
  0xa7   :  { %v2151_v25 = vmul.f32 -1.442695, %v189_v24 }
  0xa9   :  { %2258 = vpow2.f32 %v2151_v25 }
  0xac   :  { %v2257_v21 = vpop.eup %2256 }
  0xad   :  { %310 = vrot.lane.b32.xlu0 %v2257_v21, %s2587_s1  ;;  %v232_v12 = vpop.f32.mrf.mxu1 }
  0xae   :  { %v233_v13 = vadd.f32 %v232_v12, %v2728_v18  ;;  %v191_v17 = vpop.f32.mrf.mxu0 }
  0xaf   :  { %v2259_v26 = vpop.eup %2258  ;;  %v192_v19 = vadd.f32 %v191_v17, %v2735_v22 }
  0xb0   :  { %v275_v27 = vadd.f32 1.0, %v2259_v26 }
  0xb2   :  { %2260 = vrcp.f32 %v275_v27  ;;  %vm282_vm1 = vweird.f32 %v275_v27  ;;  %v288_v32 = vand.u32 2147483648, %v275_v27  ;;  %v286_v34 = vand.u32 2147483647, %v275_v27 }
  0xb4   :  { %v289_v35 = vor.u32 1.1754944e-38, %v288_v32  ;;  %vm287_vm4 = vcmp.eq.f32.partialorder %v286_v34, 8.507059e+37 }
  0xb8   :  { %v2261_v28 = vpop.eup %2260 }
  0xb9   :  { %v278_v29 = vmul.f32 %v2261_v28, %v275_v27  ;;  %vm283_vm2 = vweird.f32 %v2261_v28 }
  0xba   :  { %vm284_vm3 = vmor %vm282_vm1, %vm283_vm2 }
  0xbb   :  { %v279_v30 = vsub.f32 1.0, %v278_v29 }
  0xbd   :  { %v280_v31 = vmul.f32 %v2261_v28, %v279_v30 }
  0xbf   :  { %v281_v33 = vadd.f32 %v2261_v28, %v280_v31 }
  0xc1   :  { %v285_v36 = vsel %vm284_vm3, %v2261_v28, %v281_v33 }
  0xc2   :  { %v290_v38 = vsel %vm287_vm4, %v289_v35, %v285_v36 }
  0xc3   :  { %v308_v54 = vmul.f32 0.0, %v290_v38 }
 0x11f   :  { %v311_v37 = vpop.permute.xlu0 %310 }
 0x120   :  { %v313_v39 = vmul.f32 %v311_v37, %v290_v38 }
 0x122   :  { %315 = vrot.lane.b32.xlu0 %v313_v39, %s2587_s1 }
 0x194   :  { %v316_v55 = vpop.permute.xlu0 %315 }
 0x195   :  { %v2795_v56 = vadd.f32 %v316_v55, %v308_v54 }
 0x197   :  { %2262 = vtanh.f32 %v2795_v56 }
 0x198   :  { %2264 = vpow2.f32 %v2152_v58 }
 0x19d   :  { %v2263_v57 = vpop.eup %2262 }
 0x19e   :  { %321 = vrot.lane.b32.xlu1 %v2263_v57, %s2587_s1  ;;  %v2265_v59 = vpop.eup %2264 }
 0x19f   :  { %v276_v60 = vadd.f32 1.0, %v2265_v59 }
 0x1a1   :  { %2266 = vrcp.f32 %v276_v60  ;;  %v303_v5 = vand.u32 2147483648, %v276_v60  ;;  %vm297_vm6 = vweird.f32 %v276_v60  ;;  %v301_v6 = vand.u32 2147483647, %v276_v60 }
 0x1a3   :  { %v304_v8 = vor.u32 1.1754944e-38, %v303_v5  ;;  %vm302_vm8 = vcmp.eq.f32.partialorder %v301_v6, 8.507059e+37 }
 0x1a7   :  { %v2267_v0 = vpop.eup %2266 }
 0x1a8   :  { %v293_v1 = vmul.f32 %v2267_v0, %v276_v60  ;;  %vm298_vm5 = vweird.f32 %v2267_v0  ;;  %v118_v60 = vld [vmem:[#allocation2 + $0x10] sm:$0xff] }
 0x1a9   :  { %vm299_vm7 = vmor %vm297_vm6, %vm298_vm5  ;;  %2137 = vmatmul.msk.f32.gmra.mxu0 %vm146_vm0, %v118_v60  ;;  %2145 = vmatmul.msk.f32.gmra.mxu1 %vm146_vm0, %v118_v60  ;;  %v119_v60 = vld [vmem:[#allocation2 + $0x18] sm:$0xff] }
 0x1aa   :  { %v294_v2 = vsub.f32 1.0, %v293_v1 }
 0x1ac   :  { %v295_v3 = vmul.f32 %v2267_v0, %v294_v2 }
 0x1ae   :  { %v296_v4 = vadd.f32 %v2267_v0, %v295_v3 }
 0x1b0   :  { %v300_v7 = vsel %vm299_vm7, %v2267_v0, %v296_v4 }
 0x1b1   :  { %v305_v9 = vsel %vm302_vm8, %v304_v8, %v300_v7  ;;  %2138 = vmatmul.msk.f32.gmra.mxu0 %vm146_vm0, %v119_v60  ;;  %2146 = vmatmul.msk.f32.gmra.mxu1 %vm146_vm0, %v119_v60 }
 0x210   :  { %v322_v10 = vpop.permute.xlu1 %321 }
 0x211   :  { %v2842_v11 = vmul.f32 %v322_v10, %v305_v9 }
 0x213   :  { %2153 = vmatmul.msk.f32.vlgmr.msra.gmra.mxu2 %vm146_vm0, %v2842_v11  ;;  %2154 = vmatmul.msk.f32.vlgmr.msra.gmra.mxu3 %vm146_vm0, %v2842_v11 }
 0x214   :  { %538 = vmatpush.msra.mxu2 %v2739_v40  ;;  %558 = vmatpush.msra.mxu3 %v2741_v41 }
 0x216   :  { %539 = vmatpush.msra.mxu2 %v2743_v42  ;;  %559 = vmatpush.msra.mxu3 %v2747_v43 }
 0x218   :  { %540 = vmatpush.msra.mxu2 %v2749_v44  ;;  %560 = vmatpush.msra.mxu3 %v2751_v45 }
 0x21a   :  { %541 = vmatpush.msra.mxu2 %v2757_v46  ;;  %561 = vmatpush.msra.mxu3 %v2759_v47 }
 0x21c   :  { %542 = vmatpush.msra.mxu2 %v2765_v48  ;;  %562 = vmatpush.msra.mxu3 %v2767_v49 }
 0x21e   :  { %543 = vmatpush.msra.mxu2 %v2773_v50  ;;  %563 = vmatpush.msra.mxu3 %v2775_v51 }
 0x220   :  { %544 = vmatpush.msra.mxu2 %v2781_v52  ;;  %564 = vmatpush.msra.mxu3 %v2783_v53 }
 0x222   :  { %545 = vmatpush.msra.mxu2 %v2800_v61  ;;  %565 = vmatpush.msra.mxu3 %v2802_v62 }
 0x226   :  { %v235_v10 = vpop.f32.mrf.mxu1 }
 0x227   :  { %v236_v12 = vadd.f32 %v235_v10, %v2728_v18 }
 0x296   :  { %v365_v14 = vpop.f32.mrf.mxu3  ;;  %v345_v20 = vpop.f32.mrf.mxu2 }
 0x297   :  { %v369_v15 = vadd.f32 %v365_v14, %v233_v13  ;;  %v368_v21 = vadd.f32 %v345_v20, %v192_v19 }
 0x299   :  { %2268 = vtanh.f32 %v369_v15  ;;  %v2155_v23 = vmul.f32 -1.442695, %v368_v21  ;;  %v2156_v57 = vmul.f32 -1.442695, %v369_v15 }
 0x29b   :  { %2270 = vpow2.f32 %v2155_v23 }
 0x29f   :  { %v2269_v16 = vpop.eup %2268 }
 0x2a0   :  { %411 = vrot.lane.b32.xlu1 %v2269_v16, %s2587_s1  ;;  %v194_v16 = vpop.f32.mrf.mxu0 }
 0x2a1   :  { %v2271_v24 = vpop.eup %2270  ;;  %v195_v17 = vadd.f32 %v194_v16, %v2735_v22 }
 0x2a2   :  { %v376_v25 = vadd.f32 1.0, %v2271_v24 }
 0x2a4   :  { %2272 = vrcp.f32 %v376_v25  ;;  %v389_v31 = vand.u32 2147483648, %v376_v25  ;;  %vm383_vm10 = vweird.f32 %v376_v25  ;;  %v387_v32 = vand.u32 2147483647, %v376_v25 }
 0x2a6   :  { %v390_v34 = vor.u32 1.1754944e-38, %v389_v31  ;;  %vm388_vm12 = vcmp.eq.f32.partialorder %v387_v32, 8.507059e+37 }
 0x2aa   :  { %v2273_v26 = vpop.eup %2272 }
 0x2ab   :  { %v379_v27 = vmul.f32 %v2273_v26, %v376_v25  ;;  %vm384_vm9 = vweird.f32 %v2273_v26 }
 0x2ac   :  { %vm385_vm11 = vmor %vm383_vm10, %vm384_vm9 }
 0x2ad   :  { %v380_v28 = vsub.f32 1.0, %v379_v27 }
 0x2af   :  { %v381_v29 = vmul.f32 %v2273_v26, %v380_v28 }
 0x2b1   :  { %v382_v30 = vadd.f32 %v2273_v26, %v381_v29 }
 0x2b3   :  { %v386_v33 = vsel %vm385_vm11, %v2273_v26, %v382_v30 }
 0x2b4   :  { %v391_v36 = vsel %vm388_vm12, %v390_v34, %v386_v33 }
 0x2b5   :  { %v409_v38 = vmul.f32 %v391_v36, %v2795_v56 }
 0x312   :  { %v412_v35 = vpop.permute.xlu1 %411 }
 0x313   :  { %v414_v37 = vmul.f32 %v412_v35, %v391_v36 }
 0x315   :  { %416 = vrot.lane.b32.xlu2 %v414_v37, %s2587_s1 }
 0x36f   :  { %v417_v39 = vpop.permute.xlu2 %416 }
 0x370   :  { %v2869_v54 = vadd.f32 %v417_v39, %v409_v38 }
 0x372   :  { %2274 = vtanh.f32 %v2869_v54 }
 0x373   :  { %2276 = vpow2.f32 %v2156_v57 }
 0x378   :  { %v2275_v55 = vpop.eup %2274 }
 0x379   :  { %422 = vrot.lane.b32.xlu2 %v2275_v55, %s2587_s1  ;;  %v2277_v58 = vpop.eup %2276 }
 0x37a   :  { %v377_v59 = vadd.f32 1.0, %v2277_v58 }
 0x37c   :  { %2278 = vrcp.f32 %v377_v59  ;;  %v404_v3 = vand.u32 2147483648, %v377_v59  ;;  %vm398_vm14 = vweird.f32 %v377_v59  ;;  %v402_v4 = vand.u32 2147483647, %v377_v59 }
 0x37e   :  { %v405_v6 = vor.u32 1.1754944e-38, %v404_v3  ;;  %vm403_vm1 = vcmp.eq.f32.partialorder %v402_v4, 8.507059e+37 }
 0x382   :  { %v2279_v63 = vpop.eup %2278 }
 0x383   :  { %v394_v56 = vmul.f32 %v2279_v63, %v377_v59  ;;  %vm399_vm13 = vweird.f32 %v2279_v63 }
 0x384   :  { %vm400_vm15 = vmor %vm398_vm14, %vm399_vm13 }
 0x385   :  { %v395_v0 = vsub.f32 1.0, %v394_v56 }
 0x387   :  { %v396_v1 = vmul.f32 %v2279_v63, %v395_v0 }
 0x389   :  { %v397_v2 = vadd.f32 %v2279_v63, %v396_v1 }
 0x38b   :  { %v401_v5 = vsel %vm400_vm15, %v2279_v63, %v397_v2 }
 0x38c   :  { %v406_v7 = vsel %vm403_vm1, %v405_v6, %v401_v5 }
 0x3d3   :  { %v423_v8 = vpop.permute.xlu2 %422 }
 0x3d4   :  { %v2875_v9 = vmul.f32 %v423_v8, %v406_v7 }
 0x3d6   :  { %2157 = vmatmul.msk.f32.vlgmr.msrb.gmra.mxu2 %vm146_vm0, %v2875_v9  ;;  %2158 = vmatmul.msk.f32.vlgmr.msrb.gmra.mxu3 %vm146_vm0, %v2875_v9 }
 0x3d7   :  { %639 = vmatpush.msrb.mxu2 %v2739_v40  ;;  %659 = vmatpush.msrb.mxu3 %v2741_v41 }
 0x3d9   :  { %640 = vmatpush.msrb.mxu2 %v2743_v42  ;;  %660 = vmatpush.msrb.mxu3 %v2747_v43 }
 0x3db   :  { %641 = vmatpush.msrb.mxu2 %v2749_v44  ;;  %661 = vmatpush.msrb.mxu3 %v2751_v45 }
 0x3dd   :  { %642 = vmatpush.msrb.mxu2 %v2757_v46  ;;  %662 = vmatpush.msrb.mxu3 %v2759_v47 }
 0x3df   :  { %643 = vmatpush.msrb.mxu2 %v2765_v48  ;;  %663 = vmatpush.msrb.mxu3 %v2767_v49 }
 0x3e1   :  { %644 = vmatpush.msrb.mxu2 %v2773_v50  ;;  %664 = vmatpush.msrb.mxu3 %v2775_v51 }
 0x3e3   :  { %645 = vmatpush.msrb.mxu2 %v2781_v52  ;;  %665 = vmatpush.msrb.mxu3 %v2783_v53 }
 0x3e5   :  { %646 = vmatpush.msrb.mxu2 %v2800_v61  ;;  %666 = vmatpush.msrb.mxu3 %v2802_v62 }
 0x459   :  { %v466_v13 = vpop.f32.mrf.mxu3  ;;  %v446_v19 = vpop.f32.mrf.mxu2 }
 0x45a   :  { %v470_v14 = vadd.f32 %v466_v13, %v236_v12  ;;  %v469_v20 = vadd.f32 %v446_v19, %v195_v17 }
 0x45c   :  { %2280 = vtanh.f32 %v470_v14  ;;  %v2159_v21 = vmul.f32 -1.442695, %v469_v20  ;;  %v2160_v57 = vmul.f32 -1.442695, %v470_v14 }
 0x45e   :  { %2282 = vpow2.f32 %v2159_v21 }
 0x462   :  { %v2281_v15 = vpop.eup %2280 }
 0x463   :  { %512 = vrot.lane.b32.xlu0 %v2281_v15, %s2587_s1 }
 0x464   :  { %v2283_v23 = vpop.eup %2282 }
 0x465   :  { %v477_v24 = vadd.f32 1.0, %v2283_v23 }
 0x467   :  { %2284 = vrcp.f32 %v477_v24  ;;  %v490_v30 = vand.u32 2147483648, %v477_v24  ;;  %vm484_vm3 = vweird.f32 %v477_v24  ;;  %v488_v31 = vand.u32 2147483647, %v477_v24 }
 0x469   :  { %v491_v33 = vor.u32 1.1754944e-38, %v490_v30  ;;  %vm489_vm5 = vcmp.eq.f32.partialorder %v488_v31, 8.507059e+37 }
 0x46d   :  { %v2285_v25 = vpop.eup %2284 }
 0x46e   :  { %v480_v26 = vmul.f32 %v2285_v25, %v477_v24  ;;  %vm485_vm2 = vweird.f32 %v2285_v25 }
 0x46f   :  { %vm486_vm4 = vmor %vm484_vm3, %vm485_vm2 }
 0x470   :  { %v481_v27 = vsub.f32 1.0, %v480_v26 }
 0x472   :  { %v482_v28 = vmul.f32 %v2285_v25, %v481_v27 }
 0x474   :  { %v483_v29 = vadd.f32 %v2285_v25, %v482_v28  ;;  %v120_v28 = vld [vmem:[#allocation2 + $0x20] sm:$0xff] }
 0x475   :  { %2139 = vmatmul.msk.f32.gmra.mxu0 %vm146_vm0, %v120_v28  ;;  %2147 = vmatmul.msk.f32.gmra.mxu1 %vm146_vm0, %v120_v28 }
 0x476   :  { %v487_v32 = vsel %vm486_vm4, %v2285_v25, %v483_v29 }
 0x477   :  { %v492_v35 = vsel %vm489_vm5, %v491_v33, %v487_v32 }
 0x478   :  { %v510_v37 = vmul.f32 %v492_v35, %v2869_v54 }
 0x4d5   :  { %v513_v34 = vpop.permute.xlu0 %512 }
 0x4d6   :  { %v515_v36 = vmul.f32 %v513_v34, %v492_v35 }
 0x4d8   :  { %517 = vrot.lane.b32.xlu1 %v515_v36, %s2587_s1 }
 0x54a   :  { %v518_v38 = vpop.permute.xlu1 %517 }
 0x54b   :  { %v2902_v39 = vadd.f32 %v518_v38, %v510_v37 }
 0x54d   :  { %2286 = vtanh.f32 %v2902_v39 }
 0x54e   :  { %2288 = vpow2.f32 %v2160_v57 }
 0x553   :  { %v2287_v55 = vpop.eup %2286 }
 0x554   :  { %523 = vrot.lane.b32.xlu2 %v2287_v55, %s2587_s1  ;;  %v2289_v58 = vpop.eup %2288 }
 0x555   :  { %v478_v59 = vadd.f32 1.0, %v2289_v58 }
 0x557   :  { %2290 = vrcp.f32 %v478_v59  ;;  %v505_v2 = vand.u32 2147483648, %v478_v59  ;;  %vm499_vm7 = vweird.f32 %v478_v59  ;;  %v503_v3 = vand.u32 2147483647, %v478_v59 }
 0x559   :  { %v506_v5 = vor.u32 1.1754944e-38, %v505_v2  ;;  %vm504_vm9 = vcmp.eq.f32.partialorder %v503_v3, 8.507059e+37 }
 0x55d   :  { %v2291_v63 = vpop.eup %2290 }
 0x55e   :  { %v495_v54 = vmul.f32 %v2291_v63, %v478_v59  ;;  %vm500_vm6 = vweird.f32 %v2291_v63 }
 0x55f   :  { %vm501_vm8 = vmor %vm499_vm7, %vm500_vm6 }
 0x560   :  { %v496_v56 = vsub.f32 1.0, %v495_v54 }
 0x562   :  { %v497_v0 = vmul.f32 %v2291_v63, %v496_v56 }
 0x564   :  { %v498_v1 = vadd.f32 %v2291_v63, %v497_v0 }
 0x566   :  { %v502_v4 = vsel %vm501_vm8, %v2291_v63, %v498_v1 }
 0x567   :  { %v507_v6 = vsel %vm504_vm9, %v506_v5, %v502_v4 }
 0x5ae   :  { %v524_v7 = vpop.permute.xlu2 %523 }
 0x5af   :  { %v2908_v8 = vmul.f32 %v524_v7, %v507_v6 }
 0x5b1   :  { %2161 = vmatmul.msk.f32.vlgmr.msra.gmra.mxu2 %vm146_vm0, %v2908_v8  ;;  %2162 = vmatmul.msk.f32.vlgmr.msra.gmra.mxu3 %vm146_vm0, %v2908_v8 }
 0x5b2   :  { %841 = vmatpush.msra.mxu2 %v2739_v40  ;;  %861 = vmatpush.msra.mxu3 %v2741_v41  ;;  %v238_v40 = vpop.f32.mrf.mxu1 }
 0x5b3   :  { %v239_v41 = vadd.f32 %v238_v40, %v2728_v18 }
 0x5b4   :  { %842 = vmatpush.msra.mxu2 %v2743_v42  ;;  %862 = vmatpush.msra.mxu3 %v2747_v43 }
 0x5b6   :  { %843 = vmatpush.msra.mxu2 %v2749_v44  ;;  %863 = vmatpush.msra.mxu3 %v2751_v45  ;;  %v197_v45 = vpop.f32.mrf.mxu0 }
 0x5b8   :  { %844 = vmatpush.msra.mxu2 %v2757_v46  ;;  %864 = vmatpush.msra.mxu3 %v2759_v47  ;;  %v198_v46 = vadd.f32 %v197_v45, %v2735_v22 }
 0x5ba   :  { %845 = vmatpush.msra.mxu2 %v2765_v48  ;;  %865 = vmatpush.msra.mxu3 %v2767_v49  ;;  %v241_v57 = vpop.f32.mrf.mxu1 }
 0x5bb   :  { %v242_v58 = vadd.f32 %v241_v57, %v2728_v18 }
 0x5bc   :  { %846 = vmatpush.msra.mxu2 %v2773_v50  ;;  %866 = vmatpush.msra.mxu3 %v2775_v51 }
 0x5be   :  { %847 = vmatpush.msra.mxu2 %v2781_v52  ;;  %867 = vmatpush.msra.mxu3 %v2783_v53  ;;  %v200_v54 = vpop.f32.mrf.mxu0 }
 0x5bf   :  { %v201_v56 = vadd.f32 %v200_v54, %v2735_v22 }
 0x5c0   :  { %848 = vmatpush.msra.mxu2 %v2800_v61  ;;  %868 = vmatpush.msra.mxu3 %v2802_v62 }
 0x634   :  { %v567_v42 = vpop.f32.mrf.mxu3  ;;  %v547_v47 = vpop.f32.mrf.mxu2 }
 0x635   :  { %v571_v43 = vadd.f32 %v567_v42, %v239_v41  ;;  %v570_v48 = vadd.f32 %v547_v47, %v198_v46 }
 0x637   :  { %2292 = vtanh.f32 %v571_v43  ;;  %v2163_v49 = vmul.f32 -1.442695, %v570_v48  ;;  %v2164_v25 = vmul.f32 -1.442695, %v571_v43 }
 0x639   :  { %2294 = vpow2.f32 %v2163_v49  ;;  %v121_v49 = vld [vmem:[#allocation2 + $0x28] sm:$0xff] }
 0x63a   :  { %2140 = vmatmul.msk.f32.gmra.mxu0 %vm146_vm0, %v121_v49  ;;  %2148 = vmatmul.msk.f32.gmra.mxu1 %vm146_vm0, %v121_v49 }
 0x63d   :  { %v2293_v44 = vpop.eup %2292 }
 0x63e   :  { %613 = vrot.lane.b32.xlu0 %v2293_v44, %s2587_s1 }
 0x63f   :  { %v2295_v50 = vpop.eup %2294 }
 0x640   :  { %v578_v51 = vadd.f32 1.0, %v2295_v50  ;;  %v122_v50 = vld [vmem:[#allocation2 + $0x30] sm:$0xff] }
 0x642   :  { %2296 = vrcp.f32 %v578_v51  ;;  %v591_v12 = vand.u32 2147483648, %v578_v51  ;;  %vm585_vm11 = vweird.f32 %v578_v51  ;;  %v589_v13 = vand.u32 2147483647, %v578_v51  ;;  %2141 = vmatmul.msk.f32.gmra.mxu0 %vm146_vm0, %v122_v50  ;;  %2149 = vmatmul.msk.f32.gmra.mxu1 %vm146_vm0, %v122_v50 }
 0x644   :  { %v592_v15 = vor.u32 1.1754944e-38, %v591_v12  ;;  %vm590_vm13 = vcmp.eq.f32.partialorder %v589_v13, 8.507059e+37 }
 0x648   :  { %v2297_v52 = vpop.eup %2296 }
 0x649   :  { %v581_v53 = vmul.f32 %v2297_v52, %v578_v51  ;;  %vm586_vm10 = vweird.f32 %v2297_v52  ;;  %v123_v51 = vld [vmem:[#allocation2 + $0x38] sm:$0xff] }
 0x64a   :  { %vm587_vm12 = vmor %vm585_vm11, %vm586_vm10  ;;  %2142 = vmatmul.msk.f32.gmra.mxu0 %vm146_vm0, %v123_v51  ;;  %2150 = vmatmul.msk.f32.gmra.mxu1 %vm146_vm0, %v123_v51 }
 0x64b   :  { %v582_v61 = vsub.f32 1.0, %v581_v53 }
 0x64d   :  { %v583_v62 = vmul.f32 %v2297_v52, %v582_v61 }
 0x64f   :  { %v584_v10 = vadd.f32 %v2297_v52, %v583_v62 }
 0x651   :  { %v588_v14 = vsel %vm587_vm12, %v2297_v52, %v584_v10 }
 0x652   :  { %v593_v17 = vsel %vm590_vm13, %v592_v15, %v588_v14 }
 0x653   :  { %v611_v20 = vmul.f32 %v593_v17, %v2902_v39 }
 0x6b0   :  { %v614_v16 = vpop.permute.xlu0 %613 }
 0x6b1   :  { %v616_v19 = vmul.f32 %v614_v16, %v593_v17 }
 0x6b3   :  { %618 = vrot.lane.b32.xlu1 %v616_v19, %s2587_s1 }
 0x6b7   :  { %v244_v28 = vpop.f32.mrf.mxu1 }
 0x725   :  { %v619_v21 = vpop.permute.xlu1 %618 }
 0x726   :  { %v2935_v23 = vadd.f32 %v619_v21, %v611_v20 }
 0x728   :  { %2298 = vtanh.f32 %v2935_v23 }
 0x729   :  { %2300 = vpow2.f32 %v2164_v25 }
 0x72e   :  { %v2299_v24 = vpop.eup %2298 }
 0x72f   :  { %624 = vrot.lane.b32.xlu2 %v2299_v24, %s2587_s1  ;;  %v2301_v26 = vpop.eup %2300 }
 0x730   :  { %v579_v27 = vadd.f32 1.0, %v2301_v26 }
 0x732   :  { %2302 = vrcp.f32 %v579_v27  ;;  %v606_v34 = vand.u32 2147483648, %v579_v27  ;;  %vm600_vm15 = vweird.f32 %v579_v27  ;;  %v604_v35 = vand.u32 2147483647, %v579_v27 }
 0x734   :  { %v607_v37 = vor.u32 1.1754944e-38, %v606_v34  ;;  %vm605_vm2 = vcmp.eq.f32.partialorder %v604_v35, 8.507059e+37  ;;  %v203_v35 = vpop.f32.mrf.mxu0 }
 0x738   :  { %v2303_v29 = vpop.eup %2302 }
 0x739   :  { %v596_v30 = vmul.f32 %v2303_v29, %v579_v27  ;;  %vm601_vm14 = vweird.f32 %v2303_v29 }
 0x73a   :  { %vm602_vm1 = vmor %vm600_vm15, %vm601_vm14 }
 0x73b   :  { %v597_v31 = vsub.f32 1.0, %v596_v30 }
 0x73d   :  { %v598_v32 = vmul.f32 %v2303_v29, %v597_v31  ;;  %v245_v31 = vadd.f32 %v244_v28, %v2728_v18 }
 0x73f   :  { %v599_v33 = vadd.f32 %v2303_v29, %v598_v32 }
 0x741   :  { %v603_v36 = vsel %vm602_vm1, %v2303_v29, %v599_v33  ;;  %v2968_v29 = vpop.f32.mrf.mxu1 }
 0x742   :  { %v608_v38 = vsel %vm605_vm2, %v607_v37, %v603_v36  ;;  %v2974_v36 = vpop.f32.mrf.mxu0 }
 0x749   :  { %v2970_v30 = vpop.f32.mrf.mxu1 }
 0x74a   :  { %v2976_v37 = vpop.f32.mrf.mxu0 }
 0x789   :  { %v625_v39 = vpop.permute.xlu2 %624 }
 0x78a   :  { %v2941_v55 = vmul.f32 %v625_v39, %v608_v38  ;;  %v204_v38 = vadd.f32 %v203_v35, %v2735_v22 }
 0x78c   :  { %2165 = vmatmul.msk.f32.vlgmr.msrb.gmra.mxu2 %vm146_vm0, %v2941_v55  ;;  %2166 = vmatmul.msk.f32.vlgmr.msrb.gmra.mxu3 %vm146_vm0, %v2941_v55 }
 0x80f   :  { %v668_v59 = vpop.f32.mrf.mxu3  ;;  %v648_v0 = vpop.f32.mrf.mxu2 }
 0x810   :  { %v672_v60 = vadd.f32 %v668_v59, %v242_v58  ;;  %v671_v1 = vadd.f32 %v648_v0, %v201_v56 }
 0x812   :  { %2304 = vtanh.f32 %v672_v60  ;;  %v2167_v2 = vmul.f32 -1.442695, %v671_v1  ;;  %v2168_v10 = vmul.f32 -1.442695, %v672_v60 }
 0x814   :  { %2306 = vpow2.f32 %v2167_v2 }
 0x818   :  { %v2305_v63 = vpop.eup %2304 }
 0x819   :  { %714 = vrot.lane.b32.xlu0 %v2305_v63, %s2587_s1 }
 0x81a   :  { %v2307_v3 = vpop.eup %2306 }
 0x81b   :  { %v679_v4 = vadd.f32 1.0, %v2307_v3 }
 0x81d   :  { %2308 = vrcp.f32 %v679_v4  ;;  %v692_v42 = vand.u32 2147483648, %v679_v4  ;;  %vm686_vm4 = vweird.f32 %v679_v4  ;;  %v690_v43 = vand.u32 2147483647, %v679_v4 }
 0x81f   :  { %v693_v45 = vor.u32 1.1754944e-38, %v692_v42  ;;  %vm691_vm6 = vcmp.eq.f32.partialorder %v690_v43, 8.507059e+37 }
 0x823   :  { %v2309_v5 = vpop.eup %2308 }
 0x824   :  { %v682_v6 = vmul.f32 %v2309_v5, %v679_v4  ;;  %vm687_vm3 = vweird.f32 %v2309_v5 }
 0x825   :  { %vm688_vm5 = vmor %vm686_vm4, %vm687_vm3 }
 0x826   :  { %v683_v7 = vsub.f32 1.0, %v682_v6 }
 0x828   :  { %v684_v40 = vmul.f32 %v2309_v5, %v683_v7 }
 0x82a   :  { %v685_v41 = vadd.f32 %v2309_v5, %v684_v40 }
 0x82c   :  { %v689_v44 = vsel %vm688_vm5, %v2309_v5, %v685_v41 }
 0x82d   :  { %v694_v47 = vsel %vm691_vm6, %v693_v45, %v689_v44 }
 0x82e   :  { %v712_v52 = vmul.f32 %v694_v47, %v2935_v23 }
 0x88b   :  { %v715_v46 = vpop.permute.xlu0 %714 }
 0x88c   :  { %v717_v48 = vmul.f32 %v715_v46, %v694_v47 }
 0x88e   :  { %719 = vrot.lane.b32.xlu1 %v717_v48, %s2587_s1 }
 0x900   :  { %v720_v53 = vpop.permute.xlu1 %719 }
 0x901   :  { %v2958_v61 = vadd.f32 %v720_v53, %v712_v52 }
 0x903   :  { %2310 = vtanh.f32 %v2958_v61 }
 0x904   :  { %2312 = vpow2.f32 %v2168_v10 }
 0x909   :  { %v2311_v62 = vpop.eup %2310 }
 0x90a   :  { %725 = vrot.lane.b32.xlu2 %v2311_v62, %s2587_s1  ;;  %v2313_v12 = vpop.eup %2312 }
 0x90b   :  { %v680_v13 = vadd.f32 1.0, %v2313_v12 }
 0x90d   :  { %2314 = vrcp.f32 %v680_v13  ;;  %v707_v20 = vand.u32 2147483648, %v680_v13  ;;  %vm701_vm8 = vweird.f32 %v680_v13  ;;  %v705_v21 = vand.u32 2147483647, %v680_v13 }
 0x90f   :  { %v708_v24 = vor.u32 1.1754944e-38, %v707_v20  ;;  %vm706_vm10 = vcmp.eq.f32.partialorder %v705_v21, 8.507059e+37  ;;  %v207_v21 = vadd.f32 %v2974_v36, %v2735_v22 }
 0x913   :  { %v2315_v14 = vpop.eup %2314 }
 0x914   :  { %v697_v15 = vmul.f32 %v2315_v14, %v680_v13  ;;  %vm702_vm7 = vweird.f32 %v2315_v14 }
 0x915   :  { %vm703_vm9 = vmor %vm701_vm8, %vm702_vm7 }
 0x916   :  { %v698_v16 = vsub.f32 1.0, %v697_v15  ;;  %v248_v15 = vadd.f32 %v2968_v29, %v2728_v18 }
 0x918   :  { %v699_v17 = vmul.f32 %v2315_v14, %v698_v16 }
 0x91a   :  { %v700_v19 = vadd.f32 %v2315_v14, %v699_v17 }
 0x91c   :  { %v704_v23 = vsel %vm703_vm9, %v2315_v14, %v700_v19 }
 0x91d   :  { %v709_v25 = vsel %vm706_vm10, %v708_v24, %v704_v23 }
 0x964   :  { %v726_v26 = vpop.permute.xlu2 %725 }
 0x965   :  { %v2962_v27 = vmul.f32 %v726_v26, %v709_v25 }
 0x967   :  { %2169 = vmatmul.msk.f32.vlgmr.msrb.gmra.mxu0 %vm146_vm0, %v2962_v27  ;;  %2170 = vmatmul.msk.f32.vlgmr.msrb.gmra.mxu1 %vm146_vm0, %v2962_v27 }
 0x9e4   :  { %v769_v32 = vpop.f32.mrf.mxu1  ;;  %v749_v39 = vpop.f32.mrf.mxu0 }
 0x9e5   :  { %v773_v33 = vadd.f32 %v769_v32, %v245_v31  ;;  %v772_v57 = vadd.f32 %v749_v39, %v204_v38 }
 0x9e7   :  { %2316 = vtanh.f32 %v773_v33  ;;  %v2171_v58 = vmul.f32 -1.442695, %v772_v57  ;;  %v2172_v45 = vmul.f32 -1.442695, %v773_v33 }
 0x9e9   :  { %2318 = vpow2.f32 %v2171_v58 }
 0x9ed   :  { %v2317_v34 = vpop.eup %2316 }
 0x9ee   :  { %815 = vrot.lane.b32.xlu0 %v2317_v34, %s2587_s1 }
 0x9ef   :  { %v2319_v59 = vpop.eup %2318 }
 0x9f0   :  { %v780_v60 = vadd.f32 1.0, %v2319_v59  ;;  %v1046_v59 = vld [vmem:[#allocation6 + $0x70] sm:$0xff] }
 0x9f1   :  { %1157 = vmatpush.msrb.mxu0 %v1046_v59  ;;  %v1063_v59 = vld [vmem:[#allocation7 + $0x78] sm:$0xff] }
 0x9f2   :  { %2320 = vrcp.f32 %v780_v60  ;;  %v793_v2 = vand.u32 2147483648, %v780_v60  ;;  %vm787_vm12 = vweird.f32 %v780_v60  ;;  %v791_v3 = vand.u32 2147483647, %v780_v60  ;;  %1116 = vmatpush.msrb.mxu3 %v1063_v59 }
 0x9f4   :  { %v794_v5 = vor.u32 1.1754944e-38, %v793_v2  ;;  %vm792_vm14 = vcmp.eq.f32.partialorder %v791_v3, 8.507059e+37 }
 0x9f8   :  { %v2321_v63 = vpop.eup %2320 }
 0x9f9   :  { %v783_v54 = vmul.f32 %v2321_v63, %v780_v60  ;;  %vm788_vm11 = vweird.f32 %v2321_v63  ;;  %v1047_v60 = vld [vmem:[#allocation6 + $0x78] sm:$0xff] }
 0x9fa   :  { %vm789_vm13 = vmor %vm787_vm12, %vm788_vm11  ;;  %1198 = vmatpush.msrb.mxu1 %v1047_v60  ;;  %v1060_v60 = vld [vmem:[#allocation7 + $0x60] sm:$0xff] }
 0x9fb   :  { %v784_v56 = vsub.f32 1.0, %v783_v54  ;;  %v1045_v54 = vld [vmem:[#allocation6 + $0x68] sm:$0xff] }
 0x9fc   :  { %1199 = vmatpush.msrb.mxu1 %v1045_v54  ;;  %v1058_v54 = vld [vmem:[#allocation7 + $0x50] sm:$0xff] }
 0x9fd   :  { %v785_v0 = vmul.f32 %v2321_v63, %v784_v56  ;;  %v1042_v56 = vld [vmem:[#allocation6 + $0x50] sm:$0xff] }
 0x9ff   :  { %v786_v1 = vadd.f32 %v2321_v63, %v785_v0  ;;  %v1043_v0 = vld [vmem:[#allocation6 + $0x58] sm:$0xff] }
 0xa00   :  { %1200 = vmatpush.msrb.mxu1 %v1043_v0  ;;  %v1056_v0 = vld [vmem:[#allocation7 + $0x40] sm:$0xff] }
 0xa01   :  { %v790_v4 = vsel %vm789_vm13, %v2321_v63, %v786_v1  ;;  %v1044_v63 = vld [vmem:[#allocation6 + $0x60] sm:$0xff] }
 0xa02   :  { %v795_v7 = vsel %vm792_vm14, %v794_v5, %v790_v4  ;;  %1158 = vmatpush.msrb.mxu0 %v1044_v63  ;;  %v1061_v63 = vld [vmem:[#allocation7 + $0x68] sm:$0xff] }
 0xa03   :  { %v813_v41 = vmul.f32 %v795_v7, %v2958_v61  ;;  %1117 = vmatpush.msrb.mxu3 %v1061_v63 }
 0xa04   :  { %1159 = vmatpush.msrb.mxu0 %v1042_v56  ;;  %v1059_v56 = vld [vmem:[#allocation7 + $0x58] sm:$0xff] }
 0xa05   :  { %1118 = vmatpush.msrb.mxu3 %v1059_v56 }
 0xa60   :  { %v816_v6 = vpop.permute.xlu0 %815 }
 0xa61   :  { %v818_v40 = vmul.f32 %v816_v6, %v795_v7 }
 0xa63   :  { %820 = vrot.lane.b32.xlu1 %v818_v40, %s2587_s1  ;;  %v1040_v40 = vld [vmem:[#allocation6 + $0x40] sm:$0xff] }
 0xa64   :  { %1160 = vmatpush.msrb.mxu0 %v1040_v40  ;;  %v1051_v40 = vld [vmem:[#allocation7 + $0x18] sm:$0xff] }
 0xad5   :  { %v821_v42 = vpop.permute.xlu1 %820 }
 0xad6   :  { %v2981_v43 = vadd.f32 %v821_v42, %v813_v41  ;;  %v1041_v41 = vld [vmem:[#allocation6 + $0x48] sm:$0xff]  ;;  %v1038_v42 = vld [vmem:[#allocation6 + $0x30] sm:$0xff] }
 0xad7   :  { %1201 = vmatpush.msrb.mxu1 %v1041_v41  ;;  %1161 = vmatpush.msrb.mxu0 %v1038_v42 }
 0xad8   :  { %2322 = vtanh.f32 %v2981_v43 }
 0xad9   :  { %2324 = vpow2.f32 %v2172_v45  ;;  %v1036_v45 = vld [vmem:[#allocation6 + $0x20] sm:$0xff] }
 0xada   :  { %1162 = vmatpush.msrb.mxu0 %v1036_v45 }
 0xade   :  { %v2323_v44 = vpop.eup %2322 }
 0xadf   :  { %826 = vrot.lane.b32.xlu2 %v2323_v44, %s2587_s1  ;;  %v2325_v46 = vpop.eup %2324  ;;  %v1039_v44 = vld [vmem:[#allocation6 + $0x38] sm:$0xff] }
 0xae0   :  { %v781_v47 = vadd.f32 1.0, %v2325_v46  ;;  %1202 = vmatpush.msrb.mxu1 %v1039_v44  ;;  %v1034_v46 = vld [vmem:[#allocation6 + $0x10] sm:$0xff] }
 0xae1   :  { %1163 = vmatpush.msrb.mxu0 %v1034_v46 }
 0xae2   :  { %2326 = vrcp.f32 %v781_v47  ;;  %v808_v53 = vand.u32 2147483648, %v781_v47  ;;  %vm802_vm1 = vweird.f32 %v781_v47  ;;  %v806_v61 = vand.u32 2147483647, %v781_v47 }
 0xae4   :  { %v809_v10 = vor.u32 1.1754944e-38, %v808_v53  ;;  %vm807_vm3 = vcmp.eq.f32.partialorder %v806_v61, 8.507059e+37 }
 0xae8   :  { %v2327_v48 = vpop.eup %2326 }
 0xae9   :  { %v798_v49 = vmul.f32 %v2327_v48, %v781_v47  ;;  %vm803_vm15 = vweird.f32 %v2327_v48  ;;  %v1035_v47 = vld [vmem:[#allocation6 + $0x18] sm:$0xff] }
 0xaea   :  { %vm804_vm2 = vmor %vm802_vm1, %vm803_vm15 }
 0xaeb   :  { %v799_v50 = vsub.f32 1.0, %v798_v49  ;;  %v1033_v49 = vld [vmem:[#allocation6 + $0x8] sm:$0xff] }
 0xaed   :  { %v800_v51 = vmul.f32 %v2327_v48, %v799_v50 }
 0xaef   :  { %v801_v52 = vadd.f32 %v2327_v48, %v800_v51 }
 0xaf1   :  { %v805_v62 = vsel %vm804_vm2, %v2327_v48, %v801_v52  ;;  %v1032_v48 = vld [vmem:[#allocation6] sm:$0xff] }
 0xaf2   :  { %v810_v12 = vsel %vm807_vm3, %v809_v10, %v805_v62  ;;  %1164 = vmatpush.msrb.mxu0 %v1032_v48  ;;  %v1048_v48 = vld [vmem:[#allocation7] sm:$0xff] }
 0xb39   :  { %v827_v13 = vpop.permute.xlu2 %826 }
 0xb3a   :  { %v2985_v14 = vmul.f32 %v827_v13, %v810_v12 }
 0xb3c   :  { %2173 = vmatmul.msk.f32.vlgmr.msra.gmra.mxu2 %vm146_vm0, %v2985_v14  ;;  %2174 = vmatmul.msk.f32.vlgmr.msra.gmra.mxu3 %vm146_vm0, %v2985_v14 }
 0xbbf   :  { %v870_v16 = vpop.f32.mrf.mxu3  ;;  %v850_v20 = vpop.f32.mrf.mxu2 }
 0xbc0   :  { %v874_v17 = vadd.f32 %v870_v16, %v248_v15  ;;  %v873_v23 = vadd.f32 %v850_v20, %v207_v21 }
 0xbc2   :  { %2328 = vtanh.f32 %v874_v17  ;;  %v2175_v24 = vmul.f32 -1.442695, %v873_v23  ;;  %v2176_v5 = vmul.f32 -1.442695, %v874_v17 }
 0xbc4   :  { %2330 = vpow2.f32 %v2175_v24 }
 0xbc8   :  { %v2329_v19 = vpop.eup %2328 }
 0xbc9   :  { %916 = vrot.lane.b32.xlu0 %v2329_v19, %s2587_s1  ;;  %v251_v19 = vadd.f32 %v2970_v30, %v2728_v18 }
 0xbca   :  { %v2331_v25 = vpop.eup %2330 }
 0xbcb   :  { %v881_v26 = vadd.f32 1.0, %v2331_v25  ;;  %v210_v25 = vadd.f32 %v2976_v37, %v2735_v22 }
 0xbcd   :  { %2332 = vrcp.f32 %v881_v26  ;;  %v894_v34 = vand.u32 2147483648, %v881_v26  ;;  %vm888_vm5 = vweird.f32 %v881_v26  ;;  %v892_v35 = vand.u32 2147483647, %v881_v26 }
 0xbcf   :  { %v895_v39 = vor.u32 1.1754944e-38, %v894_v34  ;;  %vm893_vm7 = vcmp.eq.f32.partialorder %v892_v35, 8.507059e+37 }
 0xbd3   :  { %v2333_v28 = vpop.eup %2332 }
 0xbd4   :  { %v884_v31 = vmul.f32 %v2333_v28, %v881_v26  ;;  %vm889_vm4 = vweird.f32 %v2333_v28 }
 0xbd5   :  { %vm890_vm6 = vmor %vm888_vm5, %vm889_vm4 }
 0xbd6   :  { %v885_v32 = vsub.f32 1.0, %v884_v31 }
 0xbd8   :  { %v886_v29 = vmul.f32 %v2333_v28, %v885_v32 }
 0xbda   :  { %v887_v33 = vadd.f32 %v2333_v28, %v886_v29 }
 0xbdc   :  { %v891_v38 = vsel %vm890_vm6, %v2333_v28, %v887_v33 }
 0xbdd   :  { %v896_v57 = vsel %vm893_vm7, %v895_v39, %v891_v38 }
 0xbde   :  { %v914_v1 = vmul.f32 %v896_v57, %v2981_v43  ;;  %v1037_v43 = vld [vmem:[#allocation6 + $0x28] sm:$0xff] }
 0xbdf   :  { %1203 = vmatpush.msrb.mxu1 %v1037_v43 }
 0xbe1   :  { %1204 = vmatpush.msrb.mxu1 %v1035_v47 }
 0xbe3   :  { %1205 = vmatpush.msrb.mxu1 %v1033_v49  ;;  %v1049_v49 = vld [vmem:[#allocation7 + $0x8] sm:$0xff] }
 0xc3b   :  { %v917_v36 = vpop.permute.xlu0 %916 }
 0xc3c   :  { %v919_v58 = vmul.f32 %v917_v36, %v896_v57 }
 0xc3e   :  { %921 = vrot.lane.b32.xlu1 %v919_v58, %s2587_s1  ;;  %v1062_v58 = vld [vmem:[#allocation7 + $0x70] sm:$0xff] }
 0xc3f   :  { %1075 = vmatpush.msrb.mxu2 %v1062_v58 }
 0xc41   :  { %1076 = vmatpush.msrb.mxu2 %v1060_v60 }
 0xc43   :  { %1077 = vmatpush.msrb.mxu2 %v1058_v54 }
 0xc45   :  { %1078 = vmatpush.msrb.mxu2 %v1056_v0 }
 0xcb0   :  { %v922_v2 = vpop.permute.xlu1 %921 }
 0xcb1   :  { %v2998_v3 = vadd.f32 %v922_v2, %v914_v1  ;;  %v1057_v1 = vld [vmem:[#allocation7 + $0x48] sm:$0xff]  ;;  %v1054_v2 = vld [vmem:[#allocation7 + $0x30] sm:$0xff] }
 0xcb2   :  { %1119 = vmatpush.msrb.mxu3 %v1057_v1  ;;  %1079 = vmatpush.msrb.mxu2 %v1054_v2 }
 0xcb3   :  { %2334 = vtanh.f32 %v2998_v3 }
 0xcb4   :  { %2336 = vpow2.f32 %v2176_v5  ;;  %v1052_v5 = vld [vmem:[#allocation7 + $0x20] sm:$0xff] }
 0xcb5   :  { %1080 = vmatpush.msrb.mxu2 %v1052_v5 }
 0xcb9   :  { %v2335_v4 = vpop.eup %2334 }
 0xcba   :  { %927 = vrot.lane.b32.xlu2 %v2335_v4, %s2587_s1  ;;  %v2337_v6 = vpop.eup %2336  ;;  %v1055_v4 = vld [vmem:[#allocation7 + $0x38] sm:$0xff] }
 0xcbb   :  { %v882_v7 = vadd.f32 1.0, %v2337_v6  ;;  %v1053_v6 = vld [vmem:[#allocation7 + $0x28] sm:$0xff]  ;;  %1120 = vmatpush.msrb.mxu3 %v1055_v4 }
 0xcbd   :  { %2338 = vrcp.f32 %v882_v7  ;;  %v909_v62 = vand.u32 2147483648, %v882_v7  ;;  %vm903_vm9 = vweird.f32 %v882_v7  ;;  %v907_v10 = vand.u32 2147483647, %v882_v7  ;;  %1121 = vmatpush.msrb.mxu3 %v1053_v6 }
 0xcbf   :  { %v910_v13 = vor.u32 1.1754944e-38, %v909_v62  ;;  %vm908_vm11 = vcmp.eq.f32.partialorder %v907_v10, 8.507059e+37  ;;  %1122 = vmatpush.msrb.mxu3 %v1051_v40 }
 0xcc1   :  { %1123 = vmatpush.msrb.mxu3 %v1049_v49 }
 0xcc3   :  { %v2339_v50 = vpop.eup %2338 }
 0xcc4   :  { %v899_v51 = vmul.f32 %v2339_v50, %v882_v7  ;;  %vm904_vm8 = vweird.f32 %v2339_v50  ;;  %v1050_v7 = vld [vmem:[#allocation7 + $0x10] sm:$0xff] }
 0xcc5   :  { %vm905_vm10 = vmor %vm903_vm9, %vm904_vm8  ;;  %1081 = vmatpush.msrb.mxu2 %v1050_v7 }
 0xcc6   :  { %v900_v52 = vsub.f32 1.0, %v899_v51 }
 0xcc7   :  { %1082 = vmatpush.msrb.mxu2 %v1048_v48 }
 0xcc8   :  { %v901_v53 = vmul.f32 %v2339_v50, %v900_v52 }
 0xcca   :  { %v902_v61 = vadd.f32 %v2339_v50, %v901_v53 }
 0xccc   :  { %v906_v12 = vsel %vm905_vm10, %v2339_v50, %v902_v61 }
 0xccd   :  { %v911_v15 = vsel %vm908_vm11, %v910_v13, %v906_v12 }
 0xd14   :  { %v928_v16 = vpop.permute.xlu2 %927 }
 0xd15   :  { %v3002_v17 = vmul.f32 %v928_v16, %v911_v15 }
 0xd17   :  { %2177 = vmatmul.msk.f32.vlgmr.msra.gmra.mxu0 %vm146_vm0, %v3002_v17  ;;  %2178 = vmatmul.msk.f32.vlgmr.msra.gmra.mxu1 %vm146_vm0, %v3002_v17 }
 0xd1f   :  { %2197 = vmatmul.msk.f32.vlgmr.msrb.gmra.mxu0 %vm146_vm0, %v2842_v11  ;;  %2205 = vmatmul.msk.f32.vlgmr.msrb.gmra.mxu1 %vm146_vm0, %v2842_v11 }
 0xd27   :  { %2198 = vmatmul.msk.f32.gmra.mxu0 %vm146_vm0, %v2875_v9  ;;  %2206 = vmatmul.msk.f32.gmra.mxu1 %vm146_vm0, %v2875_v9 }
 0xd2f   :  { %2199 = vmatmul.msk.f32.gmra.mxu0 %vm146_vm0, %v2908_v8  ;;  %2207 = vmatmul.msk.f32.gmra.mxu1 %vm146_vm0, %v2908_v8 }
 0xd37   :  { %2200 = vmatmul.msk.f32.gmra.mxu0 %vm146_vm0, %v2941_v55  ;;  %2208 = vmatmul.msk.f32.gmra.mxu1 %vm146_vm0, %v2941_v55 }
 0xd3f   :  { %2201 = vmatmul.msk.f32.gmra.mxu0 %vm146_vm0, %v2962_v27  ;;  %2209 = vmatmul.msk.f32.gmra.mxu1 %vm146_vm0, %v2962_v27 }
 0xd47   :  { %2202 = vmatmul.msk.f32.gmra.mxu0 %vm146_vm0, %v2985_v14  ;;  %2210 = vmatmul.msk.f32.gmra.mxu1 %vm146_vm0, %v2985_v14 }
 0xd4f   :  { %2203 = vmatmul.msk.f32.gmra.mxu0 %vm146_vm0, %v3002_v17  ;;  %2211 = vmatmul.msk.f32.gmra.mxu1 %vm146_vm0, %v3002_v17 }
 0xd94   :  { %v971_v20 = vpop.f32.mrf.mxu1  ;;  %v951_v24 = vpop.f32.mrf.mxu0 }
 0xd95   :  { %v975_v21 = vadd.f32 %v971_v20, %v251_v19  ;;  %v974_v26 = vadd.f32 %v951_v24, %v210_v25 }
 0xd97   :  { %2340 = vtanh.f32 %v975_v21  ;;  %v2179_v28 = vmul.f32 -1.442695, %v974_v26  ;;  %v2180_v43 = vmul.f32 -1.442695, %v975_v21 }
 0xd99   :  { %2342 = vpow2.f32 %v2179_v28 }
 0xd9d   :  { %v2341_v23 = vpop.eup %2340 }
 0xd9e   :  { %1017 = vrot.lane.b32.xlu0 %v2341_v23, %s2587_s1 }
 0xd9f   :  { %v2343_v31 = vpop.eup %2342 }
 0xda0   :  { %v982_v32 = vadd.f32 1.0, %v2343_v31 }
 0xda2   :  { %2344 = vrcp.f32 %v982_v32  ;;  %v995_v35 = vand.u32 2147483648, %v982_v32  ;;  %vm989_vm13 = vweird.f32 %v982_v32  ;;  %v993_v38 = vand.u32 2147483647, %v982_v32 }
 0xda4   :  { %v996_v36 = vor.u32 1.1754944e-38, %v995_v35  ;;  %vm994_vm15 = vcmp.eq.f32.partialorder %v993_v38, 8.507059e+37 }
 0xda8   :  { %v2345_v29 = vpop.eup %2344 }
 0xda9   :  { %v985_v33 = vmul.f32 %v2345_v29, %v982_v32  ;;  %vm990_vm12 = vweird.f32 %v2345_v29 }
 0xdaa   :  { %vm991_vm14 = vmor %vm989_vm13, %vm990_vm12 }
 0xdab   :  { %v986_v34 = vsub.f32 1.0, %v985_v33 }
 0xdad   :  { %v987_v18 = vmul.f32 %v2345_v29, %v986_v34 }
 0xdaf   :  { %v988_v30 = vadd.f32 %v2345_v29, %v987_v18 }
 0xdb1   :  { %v992_v39 = vsel %vm991_vm14, %v2345_v29, %v988_v30 }
 0xdb2   :  { %v997_v37 = vsel %vm994_vm15, %v996_v36, %v992_v39 }
 0xdb3   :  { %v1015_v41 = vmul.f32 %v997_v37, %v2998_v3 }
 0xe10   :  { %v1018_v22 = vpop.permute.xlu0 %1017 }
 0xe11   :  { %v1020_v57 = vmul.f32 %v1018_v22, %v997_v37 }
 0xe13   :  { %1022 = vrot.lane.b32.xlu1 %v1020_v57, %s2587_s1 }
 0xe85   :  { %v1023_v42 = vpop.permute.xlu1 %1022 }
 0xe86   :  { %v1025_v44 = vadd.f32 %v1023_v42, %v1015_v41 }
 0xe88   :  { %2346 = vtanh.f32 %v1025_v44 }
 0xe89   :  { %2348 = vpow2.f32 %v2180_v43 }
 0xe8e   :  { %v2347_v45 = vpop.eup %2346 }
 0xe8f   :  { %1028 = vrot.lane.b32.xlu2 %v2347_v45, %s2587_s1  ;;  %v2349_v46 = vpop.eup %2348 }
 0xe90   :  { %v983_v47 = vadd.f32 1.0, %v2349_v46 }
 0xe92   :  { %2350 = vrcp.f32 %v983_v47  ;;  %v1010_v61 = vand.u32 2147483648, %v983_v47  ;;  %vm1004_vm2 = vweird.f32 %v983_v47  ;;  %v1008_v62 = vand.u32 2147483647, %v983_v47 }
 0xe94   :  { %v1011_v12 = vor.u32 1.1754944e-38, %v1010_v61  ;;  %vm1009_vm4 = vcmp.eq.f32.partialorder %v1008_v62, 8.507059e+37 }
 0xe98   :  { %v2351_v50 = vpop.eup %2350 }
 0xe99   :  { %v1000_v51 = vmul.f32 %v2351_v50, %v983_v47  ;;  %vm1005_vm1 = vweird.f32 %v2351_v50 }
 0xe9a   :  { %vm1006_vm3 = vmor %vm1004_vm2, %vm1005_vm1 }
 0xe9b   :  { %v1001_v52 = vsub.f32 1.0, %v1000_v51 }
 0xe9d   :  { %v1002_v53 = vmul.f32 %v2351_v50, %v1001_v52 }
 0xe9f   :  { %v1003_v3 = vadd.f32 %v2351_v50, %v1002_v53 }
 0xea1   :  { %v1007_v10 = vsel %vm1006_vm3, %v2351_v50, %v1003_v3 }
 0xea2   :  { %v1012_v13 = vsel %vm1009_vm4, %v1011_v12, %v1007_v10 }
 0xee9   :  { %v1029_v15 = vpop.permute.xlu2 %1028 }
 0xeea   :  { %v1031_v16 = vmul.f32 %v1029_v15, %v1012_v13 }
 0xeec   :  { %2181 = vmatmul.msk.f32.vlgmr.msrb.gmra.mxu2 %vm146_vm0, %v1031_v16  ;;  %2189 = vmatmul.msk.f32.vlgmr.msrb.gmra.mxu3 %vm146_vm0, %v1031_v16 }
 0xeed   :  { %2204 = vmatmul.msk.f32.gmra.mxu0 %vm146_vm0, %v1031_v16  ;;  %2212 = vmatmul.msk.f32.gmra.mxu1 %vm146_vm0, %v1031_v16 }
 0xef4   :  { %2182 = vmatmul.msk.f32.gmra.mxu2 %vm146_vm0, %v3002_v17  ;;  %2190 = vmatmul.msk.f32.gmra.mxu3 %vm146_vm0, %v3002_v17 }
 0xefc   :  { %2183 = vmatmul.msk.f32.gmra.mxu2 %vm146_vm0, %v2985_v14  ;;  %2191 = vmatmul.msk.f32.gmra.mxu3 %vm146_vm0, %v2985_v14  ;;  %v1231_v14 = vld [vmem:[%s3459_s6] sm:$0x3] }
 0xefd   :  { %v3083_v19 = vperm.slane %v1231_v14, 1  ;;  %v3094_v34 = vperm.slane %v1231_v14, 0 }
 0xf04   :  { %2184 = vmatmul.msk.f32.gmra.mxu2 %vm146_vm0, %v2962_v27  ;;  %2192 = vmatmul.msk.f32.gmra.mxu3 %vm146_vm0, %v2962_v27  ;;  %v1166_v27 = vpop.f32.mrf.mxu0 }
 0xf0c   :  { %2185 = vmatmul.msk.f32.gmra.mxu2 %vm146_vm0, %v2941_v55  ;;  %2193 = vmatmul.msk.f32.gmra.mxu3 %vm146_vm0, %v2941_v55  ;;  %v1207_v55 = vpop.f32.mrf.mxu1  ;;  %v3079_v17 = vpop.f32.mrf.mxu0 }
 0xf14   :  { %2186 = vmatmul.msk.f32.gmra.mxu2 %vm146_vm0, %v2908_v8  ;;  %2194 = vmatmul.msk.f32.gmra.mxu3 %vm146_vm0, %v2908_v8  ;;  %v3081_v8 = vpop.f32.mrf.mxu1 }
 0xf1c   :  { %2187 = vmatmul.msk.f32.gmra.mxu2 %vm146_vm0, %v2875_v9  ;;  %2195 = vmatmul.msk.f32.gmra.mxu3 %vm146_vm0, %v2875_v9  ;;  %v1213_v24 = vpop.f32.mrf.mxu1 }
 0xf24   :  { %2188 = vmatmul.msk.f32.gmra.mxu2 %vm146_vm0, %v2842_v11  ;;  %2196 = vmatmul.msk.f32.gmra.mxu3 %vm146_vm0, %v2842_v11  ;;  %v1172_v11 = vpop.f32.mrf.mxu0  ;;  %v1216_v33 = vpop.f32.mrf.mxu1 }
 0xf2c   :  { %v1175_v29 = vpop.f32.mrf.mxu0  ;;  %v1219_v58 = vpop.f32.mrf.mxu1 }
 0xf34   :  { %v1178_v57 = vpop.f32.mrf.mxu0  ;;  %v1222_v5 = vpop.f32.mrf.mxu1 }
 0xf3c   :  { %v1181_v4 = vpop.f32.mrf.mxu0  ;;  %v1225_v43 = vpop.f32.mrf.mxu1 }
 0xf44   :  { %v1184_v45 = vpop.f32.mrf.mxu0 }
 0xf6f   :  { %v1084_v20 = vpop.f32.mrf.mxu2  ;;  %v1125_v9 = vpop.f32.mrf.mxu3 }
 0xf70   :  { %v1208_v21 = vadd.f32 %v1207_v55, %v1125_v9  ;;  %v1167_v52 = vadd.f32 %v1166_v27, %v1084_v20 }
 0xf72   :  { %v3086_v23 = vadd.f32 %v3083_v19, %v1208_v21  ;;  %v1237_v53 = vadd.f32 %v3094_v34, %v1167_v52 }
 0xf74   :  { %2352 = vtanh.f32 %v3086_v23  ;;  %v2213_v3 = vmul.f32 -1.442695, %v1237_v53 }
 0xf76   :  { %2354 = vpow2.f32 %v2213_v3 }
 0xf77   :  { %v3089_v25 = vpop.f32.mrf.mxu2  ;;  %v3091_v26 = vpop.f32.mrf.mxu3 }
 0xf7a   :  { %v2353_v28 = vpop.eup %2352 }
 0xf7b   :  { %1310 = vrot.lane.b32.xlu0 %v2353_v28, %s2587_s1  ;;  %v3130_v28 = vld [vmem:[#allocation9 + $0x68] sm:$0xff] }
 0xf7c   :  { %v2355_v61 = vpop.eup %2354 }
 0xf7d   :  { %v1275_v62 = vadd.f32 1.0, %v2355_v61 }
 0xf7f   :  { %v1090_v31 = vpop.f32.mrf.mxu2  ;;  %v1131_v32 = vpop.f32.mrf.mxu3  ;;  %2356 = vrcp.f32 %v1275_v62  ;;  %v1288_v55 = vand.u32 2147483648, %v1275_v62  ;;  %vm1282_vm6 = vweird.f32 %v1275_v62  ;;  %v1286_v14 = vand.u32 2147483647, %v1275_v62 }
 0xf80   :  { %v1173_v18 = vadd.f32 %v1172_v11, %v1090_v31  ;;  %v1214_v30 = vadd.f32 %v1213_v24, %v1131_v32  ;;  %v3128_v24 = vld [vmem:[#allocation9 + $0x78] sm:$0xff]  ;;  %v3136_v32 = vld [vmem:[#allocation9 + $0x70] sm:$0xff] }
 0xf81   :  { %v1289_v21 = vor.u32 1.1754944e-38, %v1288_v55  ;;  %vm1287_vm8 = vcmp.eq.f32.partialorder %v1286_v14, 8.507059e+37  ;;  %1356 = vmatpush.msra.mxu3 %v3128_v24  ;;  %1459 = vmatpush.msra.mxu1 %v3128_v24  ;;  %v3134_v31 = vld [vmem:[#allocation9 + $0x58] sm:$0xff]  ;;  %v1170_v14 = vadd.f32 %v3079_v17, %v3089_v25 }
 0xf82   :  { %v3097_v35 = vadd.f32 %v3094_v34, %v1173_v18  ;;  %v3100_v38 = vadd.f32 %v3083_v19, %v1214_v30  ;;  %1336 = vmatpush.msra.mxu2 %v3136_v32  ;;  %v3144_v18 = vld [vmem:[#allocation9 + $0x50] sm:$0xff]  ;;  %1439 = vmatpush.msra.mxu0 %v3136_v32  ;;  %v3150_v30 = vld [vmem:[#allocation9 + $0x38] sm:$0xff] }
 0xf83   :  { %1357 = vmatpush.msra.mxu3 %v3130_v28  ;;  %1460 = vmatpush.msra.mxu1 %v3130_v28 }
 0xf85   :  { %v2357_v10 = vpop.eup %2356  ;;  %1358 = vmatpush.msra.mxu3 %v3134_v31  ;;  %1461 = vmatpush.msra.mxu1 %v3134_v31 }
 0xf86   :  { %v1278_v12 = vmul.f32 %v2357_v10, %v1275_v62  ;;  %vm1283_vm5 = vweird.f32 %v2357_v10 }
 0xf87   :  { %v1093_v39 = vpop.f32.mrf.mxu2  ;;  %v1134_v36 = vpop.f32.mrf.mxu3  ;;  %vm1284_vm7 = vmor %vm1282_vm6, %vm1283_vm5 }
 0xf88   :  { %v1176_v22 = vadd.f32 %v1175_v29, %v1093_v39  ;;  %v1217_v37 = vadd.f32 %v1216_v33, %v1134_v36  ;;  %v1279_v13 = vsub.f32 1.0, %v1278_v12  ;;  %v3138_v29 = vld [vmem:[#allocation9 + $0x60] sm:$0xff]  ;;  %v3142_v33 = vld [vmem:[#allocation9 + $0x48] sm:$0xff] }
 0xf89   :  { %1337 = vmatpush.msra.mxu2 %v3138_v29  ;;  %v3152_v39 = vld [vmem:[#allocation9 + $0x40] sm:$0xff]  ;;  %1440 = vmatpush.msra.mxu0 %v3138_v29  ;;  %v3158_v36 = vld [vmem:[#allocation9 + $0x28] sm:$0xff] }
 0xf8a   :  { %v3103_v59 = vadd.f32 %v3094_v34, %v1176_v22  ;;  %v3106_v60 = vadd.f32 %v3083_v19, %v1217_v37  ;;  %v1280_v15 = vmul.f32 %v2357_v10, %v1279_v13  ;;  %1359 = vmatpush.msra.mxu3 %v3142_v33  ;;  %v3160_v22 = vld [vmem:[#allocation9 + $0x30] sm:$0xff]  ;;  %1462 = vmatpush.msra.mxu1 %v3142_v33  ;;  %v3166_v37 = vld [vmem:[#allocation9 + $0x18] sm:$0xff] }
 0xf8b   :  { %1338 = vmatpush.msra.mxu2 %v3144_v18  ;;  %1441 = vmatpush.msra.mxu0 %v3144_v18 }
 0xf8c   :  { %v1281_v16 = vadd.f32 %v2357_v10, %v1280_v15  ;;  %1360 = vmatpush.msra.mxu3 %v3150_v30  ;;  %1463 = vmatpush.msra.mxu1 %v3150_v30 }
 0xf8d   :  { %1339 = vmatpush.msra.mxu2 %v3152_v39  ;;  %1442 = vmatpush.msra.mxu0 %v3152_v39 }
 0xf8e   :  { %v1285_v9 = vsel %vm1284_vm7, %v2357_v10, %v1281_v16  ;;  %1361 = vmatpush.msra.mxu3 %v3158_v36  ;;  %1464 = vmatpush.msra.mxu1 %v3158_v36  ;;  %v1211_v10 = vadd.f32 %v3081_v8, %v3091_v26 }
 0xf8f   :  { %v1096_v63 = vpop.f32.mrf.mxu2  ;;  %v1137_v54 = vpop.f32.mrf.mxu3  ;;  %v1290_v20 = vsel %vm1287_vm8, %v1289_v21, %v1285_v9  ;;  %1340 = vmatpush.msra.mxu2 %v3160_v22  ;;  %1443 = vmatpush.msra.mxu0 %v3160_v22  ;;  %v1239_v21 = vadd.f32 %v3094_v34, %v1170_v14 }
 0xf90   :  { %v1179_v56 = vadd.f32 %v1178_v57, %v1096_v63  ;;  %v1220_v0 = vadd.f32 %v1219_v58, %v1137_v54  ;;  %v3168_v57 = vld [vmem:[#allocation9 + $0x20] sm:$0xff]  ;;  %v3174_v58 = vld [vmem:[#allocation9 + $0x8] sm:$0xff]  ;;  %v3176_v63 = vld [vmem:[#allocation9 + $0x10] sm:$0xff]  ;;  %1362 = vmatpush.msra.mxu3 %v3166_v37  ;;  %1465 = vmatpush.msra.mxu1 %v3166_v37  ;;  %v1308_v54 = vmul.f32 0.0, %v1290_v20  ;;  %v1240_v12 = vadd.f32 %v3083_v19, %v1211_v10 }
 0xf91   :  { %1341 = vmatpush.msra.mxu2 %v3168_v57  ;;  %1444 = vmatpush.msra.mxu0 %v3168_v57 }
 0xf92   :  { %v3109_v1 = vadd.f32 %v3094_v34, %v1179_v56  ;;  %v3112_v2 = vadd.f32 %v3083_v19, %v1220_v0  ;;  %1363 = vmatpush.msra.mxu3 %v3174_v58  ;;  %1466 = vmatpush.msra.mxu1 %v3174_v58 }
 0xf93   :  { %1342 = vmatpush.msra.mxu2 %v3176_v63  ;;  %1445 = vmatpush.msra.mxu0 %v3176_v63 }
 0xf94   :  { %1562 = vmatpush.msrb.mxu3 %v3128_v24  ;;  %1665 = vmatpush.msrb.mxu1 %v3128_v24 }
 0xf96   :  { %1563 = vmatpush.msrb.mxu3 %v3130_v28  ;;  %1666 = vmatpush.msrb.mxu1 %v3130_v28 }
 0xf97   :  { %v1099_v6 = vpop.f32.mrf.mxu2  ;;  %v1140_v7 = vpop.f32.mrf.mxu3 }
 0xf98   :  { %v1182_v40 = vadd.f32 %v1181_v4, %v1099_v6  ;;  %v1223_v41 = vadd.f32 %v1222_v5, %v1140_v7  ;;  %1564 = vmatpush.msrb.mxu3 %v3134_v31  ;;  %1667 = vmatpush.msrb.mxu1 %v3134_v31  ;;  %v2214_v5 = vmul.f32 -1.442695, %v3086_v23 }
 0xf9a   :  { %v3115_v42 = vadd.f32 %v3094_v34, %v1182_v40  ;;  %v3118_v44 = vadd.f32 %v3083_v19, %v1223_v41  ;;  %1565 = vmatpush.msrb.mxu3 %v3142_v33  ;;  %1668 = vmatpush.msrb.mxu1 %v3142_v33  ;;  %v3209_v40 = vld [vmem:[#allocation9] sm:$0xff] }
 0xf9b   :  { %1343 = vmatpush.msra.mxu2 %v3209_v40  ;;  %1446 = vmatpush.msra.mxu0 %v3209_v40 }
 0xf9c   :  { %1566 = vmatpush.msrb.mxu3 %v3150_v30  ;;  %1669 = vmatpush.msrb.mxu1 %v3150_v30 }
 0xf9d   :  { %1542 = vmatpush.msrb.mxu2 %v3136_v32  ;;  %1645 = vmatpush.msrb.mxu0 %v3136_v32 }
 0xf9e   :  { %1567 = vmatpush.msrb.mxu3 %v3158_v36  ;;  %1670 = vmatpush.msrb.mxu1 %v3158_v36 }
 0xf9f   :  { %v1102_v46 = vpop.f32.mrf.mxu2  ;;  %v1143_v47 = vpop.f32.mrf.mxu3  ;;  %1543 = vmatpush.msrb.mxu2 %v3138_v29  ;;  %1646 = vmatpush.msrb.mxu0 %v3138_v29 }
 0xfa0   :  { %v1185_v48 = vadd.f32 %v1184_v45, %v1102_v46  ;;  %v1226_v49 = vadd.f32 %v1225_v43, %v1143_v47  ;;  %1568 = vmatpush.msrb.mxu3 %v3166_v37  ;;  %1671 = vmatpush.msrb.mxu1 %v3166_v37 }
 0xfa1   :  { %1544 = vmatpush.msrb.mxu2 %v3144_v18  ;;  %1647 = vmatpush.msrb.mxu0 %v3144_v18 }
 0xfa2   :  { %v3121_v50 = vadd.f32 %v3094_v34, %v1185_v48  ;;  %v3124_v51 = vadd.f32 %v3083_v19, %v1226_v49  ;;  %1569 = vmatpush.msrb.mxu3 %v3174_v58  ;;  %1672 = vmatpush.msrb.mxu1 %v3174_v58 }
 0xfa3   :  { %1545 = vmatpush.msrb.mxu2 %v3152_v39  ;;  %1648 = vmatpush.msrb.mxu0 %v3152_v39 }
 0xfa5   :  { %1546 = vmatpush.msrb.mxu2 %v3160_v22  ;;  %1649 = vmatpush.msrb.mxu0 %v3160_v22 }
 0xfa7   :  { %1547 = vmatpush.msrb.mxu2 %v3168_v57  ;;  %1650 = vmatpush.msrb.mxu0 %v3168_v57  ;;  %v3251_v62 = vpop.f32.mrf.mxu3  ;;  %v3257_v55 = vpop.f32.mrf.mxu2 }
 0xfa9   :  { %1548 = vmatpush.msrb.mxu2 %v3176_v63  ;;  %1651 = vmatpush.msrb.mxu0 %v3176_v63 }
 0xfab   :  { %1549 = vmatpush.msrb.mxu2 %v3209_v40  ;;  %1652 = vmatpush.msrb.mxu0 %v3209_v40 }
 0xfed   :  { %v1311_v27 = vpop.permute.xlu0 %1310 }
 0xfee   :  { %v1313_v11 = vmul.f32 %v1311_v27, %v1290_v20 }
 0xff0   :  { %1315 = vrot.lane.b32.xlu1 %v1313_v11, %s2587_s1 }
0x1062   :  { %v1316_v56 = vpop.permute.xlu1 %1315 }
0x1063   :  { %v3194_v0 = vadd.f32 %v1316_v56, %v1308_v54 }
0x1065   :  { %2358 = vtanh.f32 %v3194_v0 }
0x1066   :  { %2360 = vpow2.f32 %v2214_v5 }
0x106b   :  { %v2359_v4 = vpop.eup %2358 }
0x106c   :  { %1321 = vrot.lane.b32.xlu2 %v2359_v4, %s2587_s1  ;;  %v2361_v6 = vpop.eup %2360 }
0x106d   :  { %v1276_v7 = vadd.f32 1.0, %v2361_v6 }
0x106f   :  { %2362 = vrcp.f32 %v1276_v7  ;;  %v1303_v47 = vand.u32 2147483648, %v1276_v7  ;;  %vm1297_vm10 = vweird.f32 %v1276_v7  ;;  %v1301_v48 = vand.u32 2147483647, %v1276_v7 }
0x1071   :  { %v1304_v52 = vor.u32 1.1754944e-38, %v1303_v47  ;;  %vm1302_vm12 = vcmp.eq.f32.partialorder %v1301_v48, 8.507059e+37 }
0x1075   :  { %v2363_v23 = vpop.eup %2362 }
0x1076   :  { %v1293_v41 = vmul.f32 %v2363_v23, %v1276_v7  ;;  %vm1298_vm9 = vweird.f32 %v2363_v23 }
0x1077   :  { %vm1299_vm11 = vmor %vm1297_vm10, %vm1298_vm9 }
0x1078   :  { %v1294_v45 = vsub.f32 1.0, %v1293_v41 }
0x107a   :  { %v1295_v43 = vmul.f32 %v2363_v23, %v1294_v45 }
0x107c   :  { %v1296_v46 = vadd.f32 %v2363_v23, %v1295_v43 }
0x107e   :  { %v1300_v49 = vsel %vm1299_vm11, %v2363_v23, %v1296_v46 }
0x107f   :  { %v1305_v53 = vsel %vm1302_vm12, %v1304_v52, %v1300_v49 }
0x10c6   :  { %v1322_v3 = vpop.permute.xlu2 %1321 }
0x10c7   :  { %v3229_v61 = vmul.f32 %v1322_v3, %v1305_v53 }
0x10c9   :  { %2215 = vmatmul.msk.f32.vlgmr.msra.gmra.mxu2 %vm146_vm0, %v3229_v61  ;;  %2216 = vmatmul.msk.f32.vlgmr.msra.gmra.mxu3 %vm146_vm0, %v3229_v61 }
0x10ca   :  { %1748 = vmatpush.msra.mxu2 %v3136_v32  ;;  %1768 = vmatpush.msra.mxu3 %v3128_v24 }
0x10cc   :  { %1749 = vmatpush.msra.mxu2 %v3138_v29  ;;  %1769 = vmatpush.msra.mxu3 %v3130_v28 }
0x10ce   :  { %1750 = vmatpush.msra.mxu2 %v3144_v18  ;;  %1770 = vmatpush.msra.mxu3 %v3134_v31 }
0x10d0   :  { %1751 = vmatpush.msra.mxu2 %v3152_v39  ;;  %1771 = vmatpush.msra.mxu3 %v3142_v33 }
0x10d2   :  { %1752 = vmatpush.msra.mxu2 %v3160_v22  ;;  %1772 = vmatpush.msra.mxu3 %v3150_v30 }
0x10d4   :  { %1753 = vmatpush.msra.mxu2 %v3168_v57  ;;  %1773 = vmatpush.msra.mxu3 %v3158_v36 }
0x10d6   :  { %1754 = vmatpush.msra.mxu2 %v3176_v63  ;;  %1774 = vmatpush.msra.mxu3 %v3166_v37 }
0x10d8   :  { %1755 = vmatpush.msra.mxu2 %v3209_v40  ;;  %1775 = vmatpush.msra.mxu3 %v3174_v58 }
0x114c   :  { %v1365_v13 = vpop.f32.mrf.mxu3  ;;  %v1345_v9 = vpop.f32.mrf.mxu2 }
0x114d   :  { %v1369_v15 = vadd.f32 %v1365_v13, %v1240_v12  ;;  %v1368_v27 = vadd.f32 %v1345_v9, %v1239_v21 }
0x114f   :  { %2364 = vtanh.f32 %v1369_v15  ;;  %v2217_v20 = vmul.f32 -1.442695, %v1368_v27  ;;  %v2218_v49 = vmul.f32 -1.442695, %v1369_v15 }
0x1151   :  { %2366 = vpow2.f32 %v2217_v20 }
0x1155   :  { %v2365_v16 = vpop.eup %2364 }
0x1156   :  { %1411 = vrot.lane.b32.xlu0 %v2365_v16, %s2587_s1 }
0x1157   :  { %v2367_v8 = vpop.eup %2366 }
0x1158   :  { %v1376_v26 = vadd.f32 1.0, %v2367_v8  ;;  %v3290_v8 = vpop.f32.mrf.mxu1 }
0x115a   :  { %2368 = vrcp.f32 %v1376_v26  ;;  %v1389_v6 = vand.u32 2147483648, %v1376_v26  ;;  %vm1383_vm14 = vweird.f32 %v1376_v26  ;;  %v1387_v7 = vand.u32 2147483647, %v1376_v26 }
0x115c   :  { %v1390_v25 = vor.u32 1.1754944e-38, %v1389_v6  ;;  %vm1388_vm1 = vcmp.eq.f32.partialorder %v1387_v7, 8.507059e+37 }
0x1160   :  { %v2369_v11 = vpop.eup %2368 }
0x1161   :  { %v1379_v54 = vmul.f32 %v2369_v11, %v1376_v26  ;;  %vm1384_vm13 = vweird.f32 %v2369_v11 }
0x1162   :  { %vm1385_vm15 = vmor %vm1383_vm14, %vm1384_vm13 }
0x1163   :  { %v1380_v56 = vsub.f32 1.0, %v1379_v54 }
0x1165   :  { %v1381_v4 = vmul.f32 %v2369_v11, %v1380_v56  ;;  %v3294_v56 = vpop.f32.mrf.mxu0 }
0x1167   :  { %v1382_v5 = vadd.f32 %v2369_v11, %v1381_v4 }
0x1169   :  { %v1386_v17 = vsel %vm1385_vm15, %v2369_v11, %v1382_v5 }
0x116a   :  { %v1391_v41 = vsel %vm1388_vm1, %v1390_v25, %v1386_v17 }
0x116b   :  { %v1409_v43 = vmul.f32 %v1391_v41, %v3194_v0 }
0x11c8   :  { %v1412_v23 = vpop.permute.xlu0 %1411 }
0x11c9   :  { %v1414_v45 = vmul.f32 %v1412_v23, %v1391_v41 }
0x11cb   :  { %1416 = vrot.lane.b32.xlu1 %v1414_v45, %s2587_s1 }
0x123d   :  { %v1417_v46 = vpop.permute.xlu1 %1416 }
0x123e   :  { %v3264_v47 = vadd.f32 %v1417_v46, %v1409_v43 }
0x1240   :  { %2370 = vtanh.f32 %v3264_v47 }
0x1241   :  { %2372 = vpow2.f32 %v2218_v49 }
0x1246   :  { %v2371_v48 = vpop.eup %2370 }
0x1247   :  { %1422 = vrot.lane.b32.xlu2 %v2371_v48, %s2587_s1  ;;  %v2373_v52 = vpop.eup %2372 }
0x1248   :  { %v1377_v53 = vadd.f32 1.0, %v2373_v52 }
0x124a   :  { %2374 = vrcp.f32 %v1377_v53  ;;  %v1404_v0 = vand.u32 2147483648, %v1377_v53  ;;  %vm1398_vm3 = vweird.f32 %v1377_v53  ;;  %v1402_v14 = vand.u32 2147483647, %v1377_v53 }
0x124c   :  { %v1405_v21 = vor.u32 1.1754944e-38, %v1404_v0  ;;  %vm1403_vm5 = vcmp.eq.f32.partialorder %v1402_v14, 8.507059e+37 }
0x1250   :  { %v2375_v3 = vpop.eup %2374 }
0x1251   :  { %v1394_v10 = vmul.f32 %v2375_v3, %v1377_v53  ;;  %vm1399_vm2 = vweird.f32 %v2375_v3 }
0x1252   :  { %vm1400_vm4 = vmor %vm1398_vm3, %vm1399_vm2 }
0x1253   :  { %v1395_v12 = vsub.f32 1.0, %v1394_v10 }
0x1255   :  { %v1396_v13 = vmul.f32 %v2375_v3, %v1395_v12 }
0x1257   :  { %v1397_v16 = vadd.f32 %v2375_v3, %v1396_v13 }
0x1259   :  { %v1401_v9 = vsel %vm1400_vm4, %v2375_v3, %v1397_v16 }
0x125a   :  { %v1406_v27 = vsel %vm1403_vm5, %v1405_v21, %v1401_v9 }
0x12a1   :  { %v1423_v20 = vpop.permute.xlu2 %1422 }
0x12a2   :  { %v3268_v15 = vmul.f32 %v1423_v20, %v1406_v27 }
0x12a4   :  { %2219 = vmatmul.msk.f32.vlgmr.msra.gmra.mxu0 %vm146_vm0, %v3268_v15  ;;  %2220 = vmatmul.msk.f32.vlgmr.msra.gmra.mxu1 %vm146_vm0, %v3268_v15 }
0x12a5   :  { %1851 = vmatpush.msra.mxu0 %v3136_v32  ;;  %1871 = vmatpush.msra.mxu1 %v3128_v24 }
0x12a7   :  { %1852 = vmatpush.msra.mxu0 %v3138_v29  ;;  %1872 = vmatpush.msra.mxu1 %v3130_v28 }
0x12a9   :  { %1853 = vmatpush.msra.mxu0 %v3144_v18  ;;  %1873 = vmatpush.msra.mxu1 %v3134_v31 }
0x12ab   :  { %1854 = vmatpush.msra.mxu0 %v3152_v39  ;;  %1874 = vmatpush.msra.mxu1 %v3142_v33 }
0x12ad   :  { %1855 = vmatpush.msra.mxu0 %v3160_v22  ;;  %1875 = vmatpush.msra.mxu1 %v3150_v30 }
0x12af   :  { %1856 = vmatpush.msra.mxu0 %v3168_v57  ;;  %1876 = vmatpush.msra.mxu1 %v3158_v36 }
0x12b1   :  { %1857 = vmatpush.msra.mxu0 %v3176_v63  ;;  %1877 = vmatpush.msra.mxu1 %v3166_v37 }
0x12b3   :  { %1858 = vmatpush.msra.mxu0 %v3209_v40  ;;  %1878 = vmatpush.msra.mxu1 %v3174_v58 }
0x1321   :  { %v1468_v26 = vpop.f32.mrf.mxu1  ;;  %v1448_v4 = vpop.f32.mrf.mxu0 }
0x1322   :  { %v1472_v11 = vadd.f32 %v1468_v26, %v3100_v38  ;;  %v1471_v5 = vadd.f32 %v1448_v4, %v3097_v35 }
0x1324   :  { %2376 = vtanh.f32 %v1472_v11  ;;  %v2221_v6 = vmul.f32 -1.442695, %v1471_v5  ;;  %v2222_v16 = vmul.f32 -1.442695, %v1472_v11  ;;  %v1426_v11 = vadd.f32 %v3268_v15, %v3229_v61 }
0x1326   :  { %2378 = vpow2.f32 %v2221_v6 }
0x132a   :  { %v2377_v54 = vpop.eup %2376 }
0x132b   :  { %1514 = vrot.lane.b32.xlu0 %v2377_v54, %s2587_s1 }
0x132c   :  { %v2379_v7 = vpop.eup %2378 }
0x132d   :  { %v1479_v17 = vadd.f32 1.0, %v2379_v7 }
0x132f   :  { %2380 = vrcp.f32 %v1479_v17  ;;  %v1492_v38 = vand.u32 2147483648, %v1479_v17  ;;  %vm1486_vm7 = vweird.f32 %v1479_v17  ;;  %v1490_v46 = vand.u32 2147483647, %v1479_v17 }
0x1331   :  { %v1493_v49 = vor.u32 1.1754944e-38, %v1492_v38  ;;  %vm1491_vm9 = vcmp.eq.f32.partialorder %v1490_v46, 8.507059e+37 }
0x1335   :  { %v2381_v25 = vpop.eup %2380 }
0x1336   :  { %v1482_v23 = vmul.f32 %v2381_v25, %v1479_v17  ;;  %vm1487_vm6 = vweird.f32 %v2381_v25  ;;  %v1427_v17 = vmax.f32 %v3229_v61, %v3268_v15 }
0x1337   :  { %vm1488_vm8 = vmor %vm1486_vm7, %vm1487_vm6 }
0x1338   :  { %v1483_v41 = vsub.f32 1.0, %v1482_v23 }
0x133a   :  { %v1484_v45 = vmul.f32 %v2381_v25, %v1483_v41 }
0x133c   :  { %v1485_v43 = vadd.f32 %v2381_v25, %v1484_v45 }
0x133e   :  { %v1489_v48 = vsel %vm1488_vm8, %v2381_v25, %v1485_v43 }
0x133f   :  { %v1494_v35 = vsel %vm1491_vm9, %v1493_v49, %v1489_v48 }
0x1340   :  { %v1512_v3 = vmul.f32 %v1494_v35, %v3264_v47 }
0x139d   :  { %v1515_v52 = vpop.permute.xlu0 %1514 }
0x139e   :  { %v1517_v53 = vmul.f32 %v1515_v52, %v1494_v35 }
0x13a0   :  { %1519 = vrot.lane.b32.xlu1 %v1517_v53, %s2587_s1 }
0x1412   :  { %v1520_v10 = vpop.permute.xlu1 %1519 }
0x1413   :  { %v3299_v12 = vadd.f32 %v1520_v10, %v1512_v3 }
0x1415   :  { %2382 = vtanh.f32 %v3299_v12 }
0x1416   :  { %2384 = vpow2.f32 %v2222_v16 }
0x141b   :  { %v2383_v13 = vpop.eup %2382 }
0x141c   :  { %1525 = vrot.lane.b32.xlu2 %v2383_v13, %s2587_s1  ;;  %v2385_v0 = vpop.eup %2384 }
0x141d   :  { %v1480_v14 = vadd.f32 1.0, %v2385_v0 }
0x141f   :  { %2386 = vrcp.f32 %v1480_v14  ;;  %v1507_v47 = vand.u32 2147483648, %v1480_v14  ;;  %vm1501_vm11 = vweird.f32 %v1480_v14  ;;  %v1505_v54 = vand.u32 2147483647, %v1480_v14 }
0x1421   :  { %v1508_v5 = vor.u32 1.1754944e-38, %v1507_v47  ;;  %vm1506_vm13 = vcmp.eq.f32.partialorder %v1505_v54, 8.507059e+37 }
0x1425   :  { %v2387_v9 = vpop.eup %2386 }
0x1426   :  { %v1497_v21 = vmul.f32 %v2387_v9, %v1480_v14  ;;  %vm1502_vm10 = vweird.f32 %v2387_v9 }
0x1427   :  { %vm1503_vm12 = vmor %vm1501_vm11, %vm1502_vm10 }
0x1428   :  { %v1498_v27 = vsub.f32 1.0, %v1497_v21 }
0x142a   :  { %v1499_v20 = vmul.f32 %v2387_v9, %v1498_v27 }
0x142c   :  { %v1500_v26 = vadd.f32 %v2387_v9, %v1499_v20 }
0x142e   :  { %v1504_v4 = vsel %vm1503_vm12, %v2387_v9, %v1500_v26 }
0x142f   :  { %v1509_v6 = vsel %vm1506_vm13, %v1508_v5, %v1504_v4 }
0x1476   :  { %v1526_v7 = vpop.permute.xlu2 %1525 }
0x1477   :  { %v1528_v25 = vmul.f32 %v1526_v7, %v1509_v6 }
0x1479   :  { %v3307_v23 = vadd.f32 %v1528_v25, %v1426_v11  ;;  %v3309_v41 = vmax.f32 %v1427_v17, %v1528_v25  ;;  %2223 = vmatmul.msk.f32.vlgmr.msrb.gmra.mxu2 %vm146_vm0, %v1528_v25  ;;  %2224 = vmatmul.msk.f32.vlgmr.msrb.gmra.mxu3 %vm146_vm0, %v1528_v25 }
0x147a   :  { %1954 = vmatpush.msrb.mxu2 %v3136_v32  ;;  %1974 = vmatpush.msrb.mxu3 %v3128_v24 }
0x147c   :  { %1955 = vmatpush.msrb.mxu2 %v3138_v29  ;;  %1975 = vmatpush.msrb.mxu3 %v3130_v28 }
0x147e   :  { %1956 = vmatpush.msrb.mxu2 %v3144_v18  ;;  %1976 = vmatpush.msrb.mxu3 %v3134_v31 }
0x1480   :  { %1957 = vmatpush.msrb.mxu2 %v3152_v39  ;;  %1977 = vmatpush.msrb.mxu3 %v3142_v33 }
0x1482   :  { %1958 = vmatpush.msrb.mxu2 %v3160_v22  ;;  %1978 = vmatpush.msrb.mxu3 %v3150_v30 }
0x1484   :  { %1959 = vmatpush.msrb.mxu2 %v3168_v57  ;;  %1979 = vmatpush.msrb.mxu3 %v3158_v36 }
0x1486   :  { %1960 = vmatpush.msrb.mxu2 %v3176_v63  ;;  %1980 = vmatpush.msrb.mxu3 %v3166_v37 }
0x1488   :  { %1961 = vmatpush.msrb.mxu2 %v3209_v40  ;;  %1981 = vmatpush.msrb.mxu3 %v3174_v58 }
0x14fc   :  { %v1571_v24 = vpop.f32.mrf.mxu3  ;;  %v1551_v32 = vpop.f32.mrf.mxu2 }
0x14fd   :  { %v1575_v28 = vadd.f32 %v1571_v24, %v3106_v60  ;;  %v1574_v29 = vadd.f32 %v1551_v32, %v3103_v59 }
0x14ff   :  { %2388 = vtanh.f32 %v1575_v28  ;;  %v2225_v33 = vmul.f32 -1.442695, %v1574_v29  ;;  %v2226_v48 = vmul.f32 -1.442695, %v1575_v28 }
0x1501   :  { %2390 = vpow2.f32 %v2225_v33 }
0x1505   :  { %v2389_v31 = vpop.eup %2388 }
0x1506   :  { %1617 = vrot.lane.b32.xlu0 %v2389_v31, %s2587_s1 }
0x1507   :  { %v2391_v18 = vpop.eup %2390 }
0x1508   :  { %v1582_v30 = vadd.f32 1.0, %v2391_v18 }
0x150a   :  { %2392 = vrcp.f32 %v1582_v30  ;;  %v1595_v58 = vand.u32 2147483648, %v1582_v30  ;;  %vm1589_vm15 = vweird.f32 %v1582_v30  ;;  %v1593_v60 = vand.u32 2147483647, %v1582_v30 }
0x150c   :  { %v1596_v40 = vor.u32 1.1754944e-38, %v1595_v58  ;;  %vm1594_vm2 = vcmp.eq.f32.partialorder %v1593_v60, 8.507059e+37 }
0x1510   :  { %v2393_v39 = vpop.eup %2392 }
0x1511   :  { %v1585_v36 = vmul.f32 %v2393_v39, %v1582_v30  ;;  %vm1590_vm14 = vweird.f32 %v2393_v39 }
0x1512   :  { %vm1591_vm1 = vmor %vm1589_vm15, %vm1590_vm14 }
0x1513   :  { %v1586_v22 = vsub.f32 1.0, %v1585_v36 }
0x1515   :  { %v1587_v37 = vmul.f32 %v2393_v39, %v1586_v22 }
0x1517   :  { %v1588_v57 = vadd.f32 %v2393_v39, %v1587_v37 }
0x1519   :  { %v1592_v63 = vsel %vm1591_vm1, %v2393_v39, %v1588_v57 }
0x151a   :  { %v1597_v59 = vsel %vm1594_vm2, %v1596_v40, %v1592_v63 }
0x151b   :  { %v1615_v45 = vmul.f32 %v1597_v59, %v3299_v12 }
0x1578   :  { %v1618_v61 = vpop.permute.xlu0 %1617 }
0x1579   :  { %v1620_v15 = vmul.f32 %v1618_v61, %v1597_v59 }
0x157b   :  { %1622 = vrot.lane.b32.xlu1 %v1620_v15, %s2587_s1 }
0x15ed   :  { %v1623_v43 = vpop.permute.xlu1 %1622 }
0x15ee   :  { %v1625_v38 = vadd.f32 %v1623_v43, %v1615_v45 }
0x15f0   :  { %2394 = vtanh.f32 %v1625_v38 }
0x15f1   :  { %2396 = vpow2.f32 %v2226_v48 }
0x15f6   :  { %v2395_v46 = vpop.eup %2394 }
0x15f7   :  { %1628 = vrot.lane.b32.xlu2 %v2395_v46, %s2587_s1  ;;  %v2397_v49 = vpop.eup %2396 }
0x15f8   :  { %v1583_v52 = vadd.f32 1.0, %v2397_v49 }
0x15fa   :  { %2398 = vrcp.f32 %v1583_v52  ;;  %v1610_v16 = vand.u32 2147483648, %v1583_v52  ;;  %vm1604_vm4 = vweird.f32 %v1583_v52  ;;  %v1608_v12 = vand.u32 2147483647, %v1583_v52 }
0x15fc   :  { %v1611_v14 = vor.u32 1.1754944e-38, %v1610_v16  ;;  %vm1609_vm6 = vcmp.eq.f32.partialorder %v1608_v12, 8.507059e+37 }
0x1600   :  { %v2399_v35 = vpop.eup %2398 }
0x1601   :  { %v1600_v53 = vmul.f32 %v2399_v35, %v1583_v52  ;;  %vm1605_vm3 = vweird.f32 %v2399_v35 }
0x1602   :  { %vm1606_vm5 = vmor %vm1604_vm4, %vm1605_vm3 }
0x1603   :  { %v1601_v3 = vsub.f32 1.0, %v1600_v53 }
0x1605   :  { %v1602_v10 = vmul.f32 %v2399_v35, %v1601_v3 }
0x1607   :  { %v1603_v13 = vadd.f32 %v2399_v35, %v1602_v10 }
0x1609   :  { %v1607_v0 = vsel %vm1606_vm5, %v2399_v35, %v1603_v13 }
0x160a   :  { %v1612_v9 = vsel %vm1609_vm6, %v1611_v14, %v1607_v0 }
0x1651   :  { %v1629_v21 = vpop.permute.xlu2 %1628 }
0x1652   :  { %v3335_v27 = vmul.f32 %v1629_v21, %v1612_v9 }
0x1654   :  { %v1632_v20 = vadd.f32 %v3335_v27, %v3307_v23  ;;  %v1633_v26 = vmax.f32 %v3309_v41, %v3335_v27  ;;  %2227 = vmatmul.msk.f32.vlgmr.msrb.gmra.mxu0 %vm146_vm0, %v3335_v27  ;;  %2228 = vmatmul.msk.f32.vlgmr.msrb.gmra.mxu1 %vm146_vm0, %v3335_v27 }
0x16d1   :  { %v1674_v47 = vpop.f32.mrf.mxu1  ;;  %v1654_v5 = vpop.f32.mrf.mxu0 }
0x16d2   :  { %v1678_v54 = vadd.f32 %v1674_v47, %v3112_v2  ;;  %v1677_v6 = vadd.f32 %v1654_v5, %v3109_v1 }
0x16d4   :  { %2400 = vtanh.f32 %v1678_v54  ;;  %v2229_v7 = vmul.f32 -1.442695, %v1677_v6  ;;  %v2230_v37 = vmul.f32 -1.442695, %v1678_v54 }
0x16d6   :  { %2402 = vpow2.f32 %v2229_v7 }
0x16da   :  { %v2401_v4 = vpop.eup %2400 }
0x16db   :  { %1720 = vrot.lane.b32.xlu0 %v2401_v4, %s2587_s1 }
0x16dc   :  { %v2403_v11 = vpop.eup %2402 }
0x16dd   :  { %v1685_v17 = vadd.f32 1.0, %v2403_v11 }
0x16df   :  { %2404 = vrcp.f32 %v1685_v17  ;;  %v1698_v31 = vand.u32 2147483648, %v1685_v17  ;;  %vm1692_vm8 = vweird.f32 %v1685_v17  ;;  %v1696_v2 = vand.u32 2147483647, %v1685_v17 }
0x16e1   :  { %v1699_v29 = vor.u32 1.1754944e-38, %v1698_v31  ;;  %vm1697_vm10 = vcmp.eq.f32.partialorder %v1696_v2, 8.507059e+37 }
0x16e5   :  { %v2405_v25 = vpop.eup %2404 }
0x16e6   :  { %v1688_v23 = vmul.f32 %v2405_v25, %v1685_v17  ;;  %vm1693_vm7 = vweird.f32 %v2405_v25 }
0x16e7   :  { %vm1694_vm9 = vmor %vm1692_vm8, %vm1693_vm7 }
0x16e8   :  { %v1689_v41 = vsub.f32 1.0, %v1688_v23 }
0x16ea   :  { %v1690_v24 = vmul.f32 %v2405_v25, %v1689_v41 }
0x16ec   :  { %v1691_v28 = vadd.f32 %v2405_v25, %v1690_v24 }
0x16ee   :  { %v1695_v32 = vsel %vm1694_vm9, %v2405_v25, %v1691_v28 }
0x16ef   :  { %v1700_v1 = vsel %vm1697_vm10, %v1699_v29, %v1695_v32 }
0x16f0   :  { %v1718_v30 = vmul.f32 %v1700_v1, %v1625_v38 }
0x174d   :  { %v1721_v33 = vpop.permute.xlu0 %1720 }
0x174e   :  { %v1723_v18 = vmul.f32 %v1721_v33, %v1700_v1 }
0x1750   :  { %1725 = vrot.lane.b32.xlu1 %v1723_v18, %s2587_s1 }
0x17c2   :  { %v1726_v39 = vpop.permute.xlu1 %1725 }
0x17c3   :  { %v1728_v36 = vadd.f32 %v1726_v39, %v1718_v30 }
0x17c5   :  { %2406 = vtanh.f32 %v1728_v36 }
0x17c6   :  { %2408 = vpow2.f32 %v2230_v37 }
0x17cb   :  { %v2407_v22 = vpop.eup %2406 }
0x17cc   :  { %1731 = vrot.lane.b32.xlu2 %v2407_v22, %s2587_s1  ;;  %v2409_v57 = vpop.eup %2408 }
0x17cd   :  { %v1686_v58 = vadd.f32 1.0, %v2409_v57 }
0x17cf   :  { %2410 = vrcp.f32 %v1686_v58  ;;  %v1713_v15 = vand.u32 2147483648, %v1686_v58  ;;  %vm1707_vm12 = vweird.f32 %v1686_v58  ;;  %v1711_v45 = vand.u32 2147483647, %v1686_v58 }
0x17d1   :  { %v1714_v38 = vor.u32 1.1754944e-38, %v1713_v15  ;;  %vm1712_vm14 = vcmp.eq.f32.partialorder %v1711_v45, 8.507059e+37 }
0x17d5   :  { %v2411_v60 = vpop.eup %2410 }
0x17d6   :  { %v1703_v63 = vmul.f32 %v2411_v60, %v1686_v58  ;;  %vm1708_vm11 = vweird.f32 %v2411_v60 }
0x17d7   :  { %vm1709_vm13 = vmor %vm1707_vm12, %vm1708_vm11 }
0x17d8   :  { %v1704_v40 = vsub.f32 1.0, %v1703_v63 }
0x17da   :  { %v1705_v61 = vmul.f32 %v2411_v60, %v1704_v40 }
0x17dc   :  { %v1706_v59 = vadd.f32 %v2411_v60, %v1705_v61 }
0x17de   :  { %v1710_v43 = vsel %vm1709_vm13, %v2411_v60, %v1706_v59 }
0x17df   :  { %v1715_v46 = vsel %vm1712_vm14, %v1714_v38, %v1710_v43 }
0x1826   :  { %v1732_v48 = vpop.permute.xlu2 %1731 }
0x1827   :  { %v1734_v49 = vmul.f32 %v1732_v48, %v1715_v46 }
0x1829   :  { %2231 = vmatmul.msk.f32.vlgmr.msra.gmra.mxu2 %vm146_vm0, %v1734_v49  ;;  %2232 = vmatmul.msk.f32.vlgmr.msra.gmra.mxu3 %vm146_vm0, %v1734_v49  ;;  %v1735_v52 = vadd.f32 %v1734_v49, %v1632_v20  ;;  %v3352_v35 = vmax.f32 %v1633_v26, %v1734_v49 }
0x18ac   :  { %v1777_v53 = vpop.f32.mrf.mxu3  ;;  %v1757_v13 = vpop.f32.mrf.mxu2 }
0x18ad   :  { %v1781_v3 = vadd.f32 %v1777_v53, %v3118_v44  ;;  %v1780_v16 = vadd.f32 %v1757_v13, %v3115_v42 }
0x18af   :  { %2412 = vtanh.f32 %v1781_v3  ;;  %v2233_v12 = vmul.f32 -1.442695, %v1780_v16  ;;  %v2234_v23 = vmul.f32 -1.442695, %v1781_v3 }
0x18b1   :  { %2414 = vpow2.f32 %v2233_v12 }
0x18b5   :  { %v2413_v10 = vpop.eup %2412 }
0x18b6   :  { %1823 = vrot.lane.b32.xlu0 %v2413_v10, %s2587_s1 }
0x18b7   :  { %v2415_v0 = vpop.eup %2414 }
0x18b8   :  { %v1788_v14 = vadd.f32 1.0, %v2415_v0 }
0x18ba   :  { %2416 = vrcp.f32 %v1788_v14  ;;  %v1801_v47 = vand.u32 2147483648, %v1788_v14  ;;  %vm1795_vm1 = vweird.f32 %v1788_v14  ;;  %v1799_v44 = vand.u32 2147483647, %v1788_v14 }
0x18bc   :  { %v1802_v4 = vor.u32 1.1754944e-38, %v1801_v47  ;;  %vm1800_vm3 = vcmp.eq.f32.partialorder %v1799_v44, 8.507059e+37 }
0x18c0   :  { %v2417_v9 = vpop.eup %2416 }
0x18c1   :  { %v1791_v21 = vmul.f32 %v2417_v9, %v1788_v14  ;;  %vm1796_vm15 = vweird.f32 %v2417_v9 }
0x18c2   :  { %vm1797_vm2 = vmor %vm1795_vm1, %vm1796_vm15 }
0x18c3   :  { %v1792_v27 = vsub.f32 1.0, %v1791_v21 }
0x18c5   :  { %v1793_v20 = vmul.f32 %v2417_v9, %v1792_v27 }
0x18c7   :  { %v1794_v26 = vadd.f32 %v2417_v9, %v1793_v20 }
0x18c9   :  { %v1798_v54 = vsel %vm1797_vm2, %v2417_v9, %v1794_v26 }
0x18ca   :  { %v1803_v42 = vsel %vm1800_vm3, %v1802_v4, %v1798_v54 }
0x18cb   :  { %v1821_v7 = vmul.f32 %v1803_v42, %v1728_v36 }
0x1928   :  { %v1824_v5 = vpop.permute.xlu0 %1823 }
0x1929   :  { %v1826_v6 = vmul.f32 %v1824_v5, %v1803_v42 }
0x192b   :  { %1828 = vrot.lane.b32.xlu1 %v1826_v6, %s2587_s1 }
0x199d   :  { %v1829_v11 = vpop.permute.xlu1 %1828 }
0x199e   :  { %v1831_v17 = vadd.f32 %v1829_v11, %v1821_v7 }
0x19a0   :  { %2418 = vtanh.f32 %v1831_v17 }
0x19a1   :  { %2420 = vpow2.f32 %v2234_v23  ;;  %v1229_v23 = vadd.f32 %v3290_v8, %v3251_v62 }
0x19a6   :  { %v2419_v25 = vpop.eup %2418 }
0x19a7   :  { %1834 = vrot.lane.b32.xlu2 %v2419_v25, %s2587_s1  ;;  %v2421_v41 = vpop.eup %2420 }
0x19a8   :  { %v1789_v24 = vadd.f32 1.0, %v2421_v41  ;;  %v1252_v41 = vadd.f32 %v3083_v19, %v1229_v23  ;;  %v2255_v23 = vld [vmem:[%s3463_s10] ss:$0 sm:$0xff] }
0x19aa   :  { %2422 = vrcp.f32 %v1789_v24  ;;  %v1816_v33 = vand.u32 2147483648, %v1789_v24  ;;  %vm1810_vm5 = vweird.f32 %v1789_v24  ;;  %v1814_v1 = vand.u32 2147483647, %v1789_v24 }
0x19ac   :  { %v1817_v30 = vor.u32 1.1754944e-38, %v1816_v33  ;;  %vm1815_vm7 = vcmp.eq.f32.partialorder %v1814_v1, 8.507059e+37 }
0x19b0   :  { %v2423_v28 = vpop.eup %2422 }
0x19b1   :  { %v1806_v31 = vmul.f32 %v2423_v28, %v1789_v24  ;;  %vm1811_vm4 = vweird.f32 %v2423_v28 }
0x19b2   :  { %vm1812_vm6 = vmor %vm1810_vm5, %vm1811_vm4 }
0x19b3   :  { %v1807_v2 = vsub.f32 1.0, %v1806_v31 }
0x19b5   :  { %v1808_v32 = vmul.f32 %v2423_v28, %v1807_v2  ;;  %v1188_v2 = vadd.f32 %v3294_v56, %v3257_v55 }
0x19b7   :  { %v1809_v29 = vadd.f32 %v2423_v28, %v1808_v32 }
0x19b9   :  { %v1813_v18 = vsel %vm1812_vm6, %v2423_v28, %v1809_v29  ;;  %v1251_v29 = vadd.f32 %v3094_v34, %v1188_v2 }
0x19ba   :  { %v1818_v39 = vsel %vm1815_vm7, %v1817_v30, %v1813_v18 }
0x1a01   :  { %v1835_v36 = vpop.permute.xlu2 %1834 }
0x1a02   :  { %v3359_v22 = vmul.f32 %v1835_v36, %v1818_v39 }
0x1a04   :  { %2235 = vmatmul.msk.f32.vlgmr.msra.gmra.mxu0 %vm146_vm0, %v3359_v22  ;;  %2236 = vmatmul.msk.f32.vlgmr.msra.gmra.mxu1 %vm146_vm0, %v3359_v22  ;;  %v1838_v37 = vadd.f32 %v3359_v22, %v1735_v52  ;;  %v1839_v57 = vmax.f32 %v3352_v35, %v3359_v22 }
0x1a81   :  { %v1880_v58 = vpop.f32.mrf.mxu1  ;;  %v1860_v40 = vpop.f32.mrf.mxu0 }
0x1a82   :  { %v1884_v60 = vadd.f32 %v1880_v58, %v3124_v51  ;;  %v1883_v61 = vadd.f32 %v1860_v40, %v3121_v50  ;;  %v2054_v40 = vld [vmem:[%s3461_s8 + $0x38] sm:$0xff] }
0x1a83   :  { %2097 = vmatpush.msrb.mxu1 %v2054_v40 }
0x1a84   :  { %2424 = vtanh.f32 %v1884_v60  ;;  %v2237_v59 = vmul.f32 -1.442695, %v1883_v61  ;;  %v2238_v14 = vmul.f32 -1.442695, %v1884_v60  ;;  %v2062_v60 = vld [vmem:[%s3462_s9 + $0x38] sm:$0xff]  ;;  %v2053_v61 = vld [vmem:[%s3461_s8 + $0x30] sm:$0xff] }
0x1a85   :  { %2074 = vmatpush.msrb.mxu0 %v2062_v60  ;;  %2098 = vmatpush.msrb.mxu1 %v2053_v61 }
0x1a86   :  { %2426 = vpow2.f32 %v2237_v59  ;;  %v2060_v59 = vld [vmem:[%s3462_s9 + $0x28] sm:$0xff] }
0x1a8a   :  { %v2425_v63 = vpop.eup %2424 }
0x1a8b   :  { %1926 = vrot.lane.b32.xlu0 %v2425_v63, %s2587_s1  ;;  %v2061_v63 = vld [vmem:[%s3462_s9 + $0x30] sm:$0xff] }
0x1a8c   :  { %v2427_v15 = vpop.eup %2426  ;;  %2075 = vmatpush.msrb.mxu0 %v2061_v63 }
0x1a8d   :  { %v1891_v45 = vadd.f32 1.0, %v2427_v15  ;;  %v2052_v15 = vld [vmem:[%s3461_s8 + $0x28] sm:$0xff] }
0x1a8e   :  { %2076 = vmatpush.msrb.mxu0 %v2060_v59  ;;  %2099 = vmatpush.msrb.mxu1 %v2052_v15 }
0x1a8f   :  { %2428 = vrcp.f32 %v1891_v45  ;;  %v1904_v52 = vand.u32 2147483648, %v1891_v45  ;;  %vm1898_vm9 = vweird.f32 %v1891_v45  ;;  %v1902_v51 = vand.u32 2147483647, %v1891_v45 }
0x1a91   :  { %v1905_v53 = vor.u32 1.1754944e-38, %v1904_v52  ;;  %vm1903_vm11 = vcmp.eq.f32.partialorder %v1902_v51, 8.507059e+37 }
0x1a95   :  { %v2429_v43 = vpop.eup %2428 }
0x1a96   :  { %v1894_v38 = vmul.f32 %v2429_v43, %v1891_v45  ;;  %vm1899_vm8 = vweird.f32 %v2429_v43  ;;  %v2059_v45 = vld [vmem:[%s3462_s9 + $0x20] sm:$0xff] }
0x1a97   :  { %vm1900_vm10 = vmor %vm1898_vm9, %vm1899_vm8  ;;  %2077 = vmatpush.msrb.mxu0 %v2059_v45  ;;  %vm2114_vm9 = vcmask 31744  }
0x1a98   :  { %v1895_v46 = vsub.f32 1.0, %v1894_v38  ;;  %v2058_v38 = vld [vmem:[%s3462_s9 + $0x18] sm:$0xff] }
0x1a99   :  { %2078 = vmatpush.msrb.mxu0 %v2058_v38 }
0x1a9a   :  { %v1896_v48 = vmul.f32 %v2429_v43, %v1895_v46  ;;  %v2050_v46 = vld [vmem:[%s3461_s8 + $0x18] sm:$0xff] }
0x1a9c   :  { %v1897_v49 = vadd.f32 %v2429_v43, %v1896_v48  ;;  %v2057_v48 = vld [vmem:[%s3462_s9 + $0x10] sm:$0xff] }
0x1a9d   :  { %2079 = vmatpush.msrb.mxu0 %v2057_v48 }
0x1a9e   :  { %v1901_v35 = vsel %vm1900_vm10, %v2429_v43, %v1897_v49  ;;  %v2051_v43 = vld [vmem:[%s3461_s8 + $0x20] sm:$0xff] }
0x1a9f   :  { %v1906_v50 = vsel %vm1903_vm11, %v1905_v53, %v1901_v35  ;;  %2100 = vmatpush.msrb.mxu1 %v2051_v43 }
0x1aa0   :  { %v1924_v13 = vmul.f32 %v1906_v50, %v1831_v17 }
0x1aa1   :  { %2101 = vmatpush.msrb.mxu1 %v2050_v46 }
0x1afd   :  { %v1927_v3 = vpop.permute.xlu0 %1926 }
0x1afe   :  { %v1929_v10 = vmul.f32 %v1927_v3, %v1906_v50 }
0x1b00   :  { %1931 = vrot.lane.b32.xlu1 %v1929_v10, %s2587_s1  ;;  %v2056_v10 = vld [vmem:[%s3462_s9 + $0x8] sm:$0xff] }
0x1b01   :  { %2080 = vmatpush.msrb.mxu0 %v2056_v10 }
0x1b72   :  { %v1932_v16 = vpop.permute.xlu1 %1931 }
0x1b73   :  { %v3372_v12 = vadd.f32 %v1932_v16, %v1924_v13  ;;  %v2049_v13 = vld [vmem:[%s3461_s8 + $0x10] sm:$0xff]  ;;  %v2055_v16 = vld [vmem:[%s3462_s9] sm:$0xff] }
0x1b74   :  { %2102 = vmatpush.msrb.mxu1 %v2049_v13  ;;  %2081 = vmatpush.msrb.mxu0 %v2055_v16 }
0x1b75   :  { %2430 = vtanh.f32 %v3372_v12 }
0x1b76   :  { %2432 = vpow2.f32 %v2238_v14 }
0x1b7b   :  { %v2431_v0 = vpop.eup %2430 }
0x1b7c   :  { %1937 = vrot.lane.b32.xlu2 %v2431_v0, %s2587_s1  ;;  %v2433_v9 = vpop.eup %2432  ;;  %v2047_v0 = vld [vmem:[%s3461_s8] sm:$0xff] }
0x1b7d   :  { %v1892_v21 = vadd.f32 1.0, %v2433_v9 }
0x1b7f   :  { %2434 = vrcp.f32 %v1892_v21  ;;  %v1919_v54 = vand.u32 2147483648, %v1892_v21  ;;  %vm1913_vm13 = vweird.f32 %v1892_v21  ;;  %v1917_v4 = vand.u32 2147483647, %v1892_v21 }
0x1b81   :  { %v1920_v42 = vor.u32 1.1754944e-38, %v1919_v54  ;;  %vm1918_vm15 = vcmp.eq.f32.partialorder %v1917_v4, 8.507059e+37 }
0x1b85   :  { %v2435_v27 = vpop.eup %2434 }
0x1b86   :  { %v1909_v20 = vmul.f32 %v2435_v27, %v1892_v21  ;;  %vm1914_vm12 = vweird.f32 %v2435_v27 }
0x1b87   :  { %vm1915_vm14 = vmor %vm1913_vm13, %vm1914_vm12 }
0x1b88   :  { %v1910_v26 = vsub.f32 1.0, %v1909_v20 }
0x1b8a   :  { %v1911_v47 = vmul.f32 %v2435_v27, %v1910_v26 }
0x1b8c   :  { %v1912_v44 = vadd.f32 %v2435_v27, %v1911_v47 }
0x1b8e   :  { %v1916_v5 = vsel %vm1915_vm14, %v2435_v27, %v1912_v44 }
0x1b8f   :  { %v1921_v6 = vsel %vm1918_vm15, %v1920_v42, %v1916_v5 }
0x1bd6   :  { %v1938_v7 = vpop.permute.xlu2 %1937 }
0x1bd7   :  { %v1940_v11 = vmul.f32 %v1938_v7, %v1921_v6 }
0x1bd9   :  { %2239 = vmatmul.msk.f32.vlgmr.msrb.gmra.mxu2 %vm146_vm0, %v1940_v11  ;;  %2240 = vmatmul.msk.f32.vlgmr.msrb.gmra.mxu3 %vm146_vm0, %v1940_v11  ;;  %v3378_v17 = vadd.f32 %v1940_v11, %v1838_v37  ;;  %v3380_v25 = vmax.f32 %v1839_v57, %v1940_v11 }
0x1c5c   :  { %v1983_v24 = vpop.f32.mrf.mxu3  ;;  %v1963_v32 = vpop.f32.mrf.mxu2 }
0x1c5d   :  { %v1987_v28 = vadd.f32 %v1983_v24, %v1252_v41  ;;  %v1986_v33 = vadd.f32 %v1963_v32, %v1251_v29 }
0x1c5f   :  { %2436 = vtanh.f32 %v1987_v28  ;;  %v2241_v1 = vmul.f32 -1.442695, %v1986_v33  ;;  %v2242_v53 = vmul.f32 -1.442695, %v1987_v28 }
0x1c61   :  { %2438 = vpow2.f32 %v2241_v1 }
0x1c65   :  { %v2437_v31 = vpop.eup %2436 }
0x1c66   :  { %2029 = vrot.lane.b32.xlu0 %v2437_v31, %s2587_s1 }
0x1c67   :  { %v2439_v18 = vpop.eup %2438 }
0x1c68   :  { %v1994_v30 = vadd.f32 1.0, %v2439_v18 }
0x1c6a   :  { %2440 = vrcp.f32 %v1994_v30  ;;  %v2007_v22 = vand.u32 2147483648, %v1994_v30  ;;  %vm2001_vm2 = vweird.f32 %v1994_v30  ;;  %v2005_v37 = vand.u32 2147483647, %v1994_v30 }
0x1c6c   :  { %v2008_v56 = vor.u32 1.1754944e-38, %v2007_v22  ;;  %vm2006_vm4 = vcmp.eq.f32.partialorder %v2005_v37, 8.507059e+37 }
0x1c70   :  { %v2441_v62 = vpop.eup %2440 }
0x1c71   :  { %v1997_v19 = vmul.f32 %v2441_v62, %v1994_v30  ;;  %vm2002_vm1 = vweird.f32 %v2441_v62 }
0x1c72   :  { %vm2003_vm3 = vmor %vm2001_vm2, %vm2002_vm1 }
0x1c73   :  { %v1998_v8 = vsub.f32 1.0, %v1997_v19 }
0x1c75   :  { %v1999_v39 = vmul.f32 %v2441_v62, %v1998_v8 }
0x1c77   :  { %v2000_v36 = vadd.f32 %v2441_v62, %v1999_v39 }
0x1c79   :  { %v2004_v55 = vsel %vm2003_vm3, %v2441_v62, %v2000_v36 }
0x1c7a   :  { %v2009_v57 = vsel %vm2006_vm4, %v2008_v56, %v2004_v55 }
0x1c7b   :  { %v2027_v49 = vmul.f32 %v2009_v57, %v3372_v12  ;;  %v2048_v12 = vld [vmem:[%s3461_s8 + $0x8] sm:$0xff] }
0x1c7c   :  { %2103 = vmatpush.msrb.mxu1 %v2048_v12 }
0x1c7e   :  { %2104 = vmatpush.msrb.mxu1 %v2047_v0 }
0x1cd8   :  { %v2030_v34 = vpop.permute.xlu0 %2029 }
0x1cd9   :  { %v2032_v58 = vmul.f32 %v2030_v34, %v2009_v57 }
0x1cdb   :  { %2034 = vrot.lane.b32.xlu1 %v2032_v58, %s2587_s1 }
0x1d4d   :  { %v2035_v52 = vpop.permute.xlu1 %2034 }
0x1d4e   :  { %v2037_v51 = vadd.f32 %v2035_v52, %v2027_v49 }
0x1d50   :  { %2442 = vtanh.f32 %v2037_v51 }
0x1d51   :  { %2444 = vpow2.f32 %v2242_v53 }
0x1d56   :  { %v2443_v35 = vpop.eup %2442 }
0x1d57   :  { %2040 = vrot.lane.b32.xlu2 %v2443_v35, %s2587_s1  ;;  %v2445_v3 = vpop.eup %2444 }
0x1d58   :  { %v1995_v50 = vadd.f32 1.0, %v2445_v3 }
0x1d5a   :  { %2446 = vrcp.f32 %v1995_v50  ;;  %v2022_v26 = vand.u32 2147483648, %v1995_v50  ;;  %vm2016_vm6 = vweird.f32 %v1995_v50  ;;  %v2020_v47 = vand.u32 2147483647, %v1995_v50 }
0x1d5c   :  { %v2023_v54 = vor.u32 1.1754944e-38, %v2022_v26  ;;  %vm2021_vm8 = vcmp.eq.f32.partialorder %v2020_v47, 8.507059e+37 }
0x1d60   :  { %v2447_v14 = vpop.eup %2446 }
0x1d61   :  { %v2012_v9 = vmul.f32 %v2447_v14, %v1995_v50  ;;  %vm2017_vm5 = vweird.f32 %v2447_v14 }
0x1d62   :  { %vm2018_vm7 = vmor %vm2016_vm6, %vm2017_vm5 }
0x1d63   :  { %v2013_v21 = vsub.f32 1.0, %v2012_v9 }
0x1d65   :  { %v2014_v27 = vmul.f32 %v2447_v14, %v2013_v21 }
0x1d67   :  { %v2015_v20 = vadd.f32 %v2447_v14, %v2014_v27 }
0x1d69   :  { %v2019_v44 = vsel %vm2018_vm7, %v2447_v14, %v2015_v20 }
0x1d6a   :  { %v2024_v4 = vsel %vm2021_vm8, %v2023_v54, %v2019_v44 }
0x1db1   :  { %v2041_v5 = vpop.permute.xlu2 %2040 }
0x1db2   :  { %v2043_v42 = vmul.f32 %v2041_v5, %v2024_v4 }
0x1db4   :  { %v2044_v6 = vadd.f32 %v2043_v42, %v3378_v17  ;;  %v2045_v7 = vmax.f32 %v3380_v25, %v2043_v42 }
0x1db6   :  { %v2046_v11 = vmul.f32 0.125, %v2044_v6  ;;  %2243 = vmatmul.msk.f32.vlgmr.msrb.gmra.mxu0 %vm146_vm0, %v2045_v7 }
0x1db8   :  { %2244 = vmatmul.msk.f32.vlgmr.msrb.gmra.mxu1 %vm146_vm0, %v2046_v11 }
0x1e33   :  { %v2083_v41 = vpop.f32.mrf.mxu0 }
0x1e35   :  { %v2106_v24 = vpop.f32.mrf.mxu1 }
0x1e36   :  { %v2107_v28 = vadd.f32 %v2106_v24, %v2083_v41 }
0x1e38   :  { %v2113_v31 = vadd.f32 %v2255_v23, %v2107_v28 }
0x1e3a   :  { %v2115_v2 = vsel %vm2114_vm9, %v2113_v31, -inf }
0x1e3b   :  { %2116 = vmax.xlane.f32.xlu0 %v2115_v2 }
0x1eae   :  { %v2117_v17 = vpop.xlane.xlu0 %2116 }
0x1eaf   :  { %v2118_v32 = vsub.f32 %v2113_v31, %v2117_v17 }
0x1eb1   :  { %v2119_v25 = vmul.f32 1.442695, %v2118_v32 }
0x1eb3   :  { %2448 = vpow2.f32 %v2119_v25 }
0x1eb9   :  { %v2449_v29 = vpop.eup %2448 }
0x1eba   :  { %v2121_v33 = vsel %vm2114_vm9, %v2449_v29, 0.0 }
0x1ebb   :  { %2122 = vadd.xlane.f32.xlu1 %v2121_v33 }
0x1f2e   :  { %v2123_v1 = vpop.xlane.xlu1 %2122 }
0x1f2f   :  { %2450 = vlog2.f32 %v2123_v1 }
0x1f35   :  { %v2451_v18 = vpop.eup %2450 }
0x1f36   :  { %v2125_v30 = vmul.f32 0.6931472, %v2451_v18 }
0x1f38   :  { %v2126_v62 = vsub.f32 %v2118_v32, %v2125_v30 }
0x1f3a   :  { %2127 = vst.msk [vmem:[%s3464_s11] sm:$0xff] %vm2114_vm9, %v2126_v62 }
0x1f3b   :  { %2132 = vsyncpa [#allocation3], 1 }
0x1f3c   :  { %2133 = vsyncpa [#allocation5], 1 }
0x1f3d   :  { %2134 = vsyncpa [#allocation8], 1 }

</bundles_post_ra>
